<compile_context>
chip_gen: v7x
topology: tpu7x:2x2x1
jax: 0.10.0
libtpu: 0.0.40
codegen_flags: <defaults>
</compile_context>

<pallas_src>
import functools

import jax
import jax.numpy as jnp
from jax import lax
from jax.experimental import pallas as pl
from jax.experimental.pallas import tpu as pltpu


def _self_attention_kernel(x_ref, w_qkv_ref, b_qkv_ref, out_ref, attn_ref, *,
                           seq_len, hidden_dim, batch_block):
    """One grid step handles `batch_block` batches stacked along rows.

    x_ref:     (batch_block * seq_len, hidden_dim)        bf16
    w_qkv_ref: (hidden_dim, 3 * hidden_dim)               bf16   [Wq | Wk | Wv]
    b_qkv_ref: (1, 3 * hidden_dim)                        f32
    out_ref:   (batch_block * seq_len, hidden_dim)        f32
    attn_ref:  (batch_block*seq_len*seq_len // 128, 128)  f32 (lane-dense) or
               (batch_block * seq_len, seq_len)           f32 (natural fallback)
    """
    # Fused QKV projection for the whole block: one wide MXU push with
    # M = batch_block*S, N = 3H.  bf16 operands straight from the refs, f32
    # accumulation, bias added in f32.
    qkv = jnp.dot(x_ref[...], w_qkv_ref[...],
                  preferred_element_type=jnp.float32) + b_qkv_ref[...]

    h = hidden_dim
    q = qkv[:, :h].reshape(batch_block, seq_len, h).astype(jnp.bfloat16)
    k = qkv[:, h:2 * h].reshape(batch_block, seq_len, h).astype(jnp.bfloat16)
    v = qkv[:, 2 * h:].reshape(batch_block, seq_len, h).astype(jnp.bfloat16)

    # Batched scores over all batch_block batches in one dot_general (contract last
    # axes, batch over axis 0): no explicit transpose, no per-batch MXU drain.
    scale = 1.0 / (float(hidden_dim) ** 0.5)
    scores = lax.dot_general(
        q, k, dimension_numbers=(((2,), (2,)), ((0,), (0,))),
        preferred_element_type=jnp.float32) * scale                 # (BB, S, S) f32

    # sigmoid output lies in (0, 1), so exp's input is bounded and the usual
    # max-subtraction is safely omitted (do NOT remove the sigmoid without
    # reinstating it).  Elementwise path kept in f32 (v5e-safe).
    e = jnp.exp(jax.nn.sigmoid(scores))
    denom = jnp.sum(e, axis=-1, keepdims=True)
    attn = e * pl.reciprocal(denom, approx=True)                    # (BB, S, S) f32

    out = lax.dot_general(
        attn.astype(jnp.bfloat16), v,
        dimension_numbers=(((2,), (1,)), ((0,), (0,))),
        preferred_element_type=jnp.float32)                         # (BB, S, H) f32

    out_ref[...] = out.reshape(out_ref.shape).astype(out_ref.dtype)
    attn_ref[...] = attn.reshape(attn_ref.shape).astype(attn_ref.dtype)


def _pick_batch_block(batch, seq_len, target_rows=128):
    """Largest batch_block <= ceil(target_rows / seq_len) that divides `batch` and
    keeps the per-step row count a multiple of 8 (>=128 rows fills the MXU M dim)."""
    for bb in range(min(batch, max(1, -(-target_rows // seq_len))), 0, -1):
        if batch % bb == 0 and (bb * seq_len) % 8 == 0:
            return bb
    return batch


def _build_call(batch, seq_len, hidden_dim, batch_block, out_dtype, *,
                lane_dense_attn, single_buffer_weights):
    rows = batch_block * seq_len
    grid = (batch // batch_block,)
    h3 = 3 * hidden_dim

    # Constant-index weight/bias never need a second pipeline buffer.
    w_kwargs = {"pipeline_mode": pl.Buffered(1)} if single_buffer_weights else {}

    if lane_dense_attn:
        attn_shape = (batch * seq_len * seq_len // 128, 128)
        attn_block = (batch_block * seq_len * seq_len // 128, 128)
    else:
        attn_shape = (batch * seq_len, seq_len)
        attn_block = (rows, seq_len)

    kernel = functools.partial(
        _self_attention_kernel, seq_len=seq_len, hidden_dim=hidden_dim,
        batch_block=batch_block)

    flops = batch * (2 * seq_len * hidden_dim * h3          # fused QKV projection
                     + 2 * seq_len * seq_len * hidden_dim   # Q @ K^T
                     + 2 * seq_len * seq_len * hidden_dim)  # attn @ V
    transcendentals = 4 * batch * seq_len * seq_len          # sigmoid + exp + rcp
    bytes_accessed = (2 * batch * seq_len * hidden_dim       # bf16 x
                      + 2 * hidden_dim * h3 + 4 * h3         # bf16 W, f32 b
                      + 4 * batch * seq_len * hidden_dim     # f32 out
                      + 4 * batch * seq_len * seq_len)       # f32 attn

    return pl.pallas_call(
        kernel,
        out_shape=(
            jax.ShapeDtypeStruct((batch * seq_len, hidden_dim), out_dtype),
            jax.ShapeDtypeStruct(attn_shape, out_dtype),
        ),
        grid_spec=pltpu.PrefetchScalarGridSpec(
            num_scalar_prefetch=0,
            grid=grid,
            in_specs=[
                pl.BlockSpec((rows, hidden_dim), lambda i: (i, 0)),         # x
                pl.BlockSpec((hidden_dim, h3), lambda i: (0, 0), **w_kwargs),  # W_qkv
                pl.BlockSpec((1, h3), lambda i: (0, 0), **w_kwargs),           # b_qkv
            ],
            out_specs=[
                pl.BlockSpec((rows, hidden_dim), lambda i: (i, 0)),         # out
                pl.BlockSpec(attn_block, lambda i: (i, 0)),                 # attn
            ],
        ),
        compiler_params=pltpu.CompilerParams(
            dimension_semantics=("parallel",),        # shards batch steps on v7x
            vmem_limit_bytes=32 * 1024 * 1024),
        cost_estimate=pl.CostEstimate(
            flops=flops, transcendentals=transcendentals,
            bytes_accessed=bytes_accessed),
    )


def self_attention_unit(x, wq, bq, wk, bk, wv, bv):
    """x: (B, S, H); wq/wk/wv: (H, H) pre-transposed for x @ W; bq/bk/bv: (H,)."""
    B, S, H = x.shape
    batch_block = _pick_batch_block(B, S)

    # Fuse the three projections into one (H, 3H) weight + (1, 3H) bias.  x and W are
    # cast to bf16 in the wrapper (halves DMA/VMEM bytes); bias stays f32 and is added
    # after the f32-accumulated dot.
    w_qkv = jnp.concatenate([wq, wk, wv], axis=1).astype(jnp.bfloat16)
    b_qkv = jnp.concatenate([bq, bk, bv], axis=0).reshape(1, 3 * H).astype(jnp.float32)
    x2d = x.reshape(B * S, H).astype(jnp.bfloat16)

    # Lane-dense attention-weights writeback is only needed (and only legal) when the
    # per-step block flattens into whole (8, 128) tiles; at production S (>=128) the
    # natural (.., S) layout is already lane-dense.
    lane_dense_attn = (S < 128) and (batch_block * S * S) % (8 * 128) == 0

    def run(optimized):
        call = _build_call(B, S, H, batch_block, x.dtype,
                           lane_dense_attn=optimized and lane_dense_attn,
                           single_buffer_weights=optimized)
        out2d, attn_flat = call(x2d, w_qkv, b_qkv)
        return out2d.reshape(B, S, H), attn_flat.reshape(B, S, S)

    try:
        return run(True)
    except Exception:
        # Fallback if this jax/libtpu build rejects pl.Buffered(1) pipeline_mode or the
        # lane-dense attn reshape; functionally identical, marginally less tuned.
        return run(False)


def reference(x, wq, bq, wk, bk, wv, bv):
    q = x @ wq + bq
    k = x @ wk + bk
    v = x @ wv + bv
    scores = jnp.einsum("bsh,bth->bst", q, k) / (x.shape[-1] ** 0.5)
    attn = jax.nn.softmax(jax.nn.sigmoid(scores), axis=-1)
    return jnp.einsum("bst,bth->bsh", attn, v), attn


if __name__ == "__main__":
    # H is a multiple of 128 (lane-dense main output, MXU-friendly K/N).  batch is
    # chosen so each grid step stacks 128 rows (batch_block=16) into the fused QKV
    # projection and the grid has more than one step, so the batch pipeline / v7x
    # megacore split is actually exercised.  Total data is still tiny (~1 MB).
    batch, seq_len, hidden_dim = 32, 8, 128

    key = jax.random.PRNGKey(0)
    kx, kwq, kbq, kwk, kbk, kwv, kbv = jax.random.split(key, 7)

    x = jax.random.normal(kx, (batch, seq_len, hidden_dim), dtype=jnp.float32)

    # nn.Linear default init ~ U(-1/sqrt(H), 1/sqrt(H)); weights stored pre-transposed
    # ([in, out]) so the kernel computes x @ W (== nn.Linear's x @ W_torch.T).
    bound = 1.0 / (hidden_dim ** 0.5)
    init = lambda k, shape: jax.random.uniform(k, shape, jnp.float32, -bound, bound)
    wq = init(kwq, (hidden_dim, hidden_dim))
    wk = init(kwk, (hidden_dim, hidden_dim))
    wv = init(kwv, (hidden_dim, hidden_dim))
    bq = init(kbq, (hidden_dim,))
    bk = init(kbk, (hidden_dim,))
    bv = init(kbv, (hidden_dim,))

    out, attn = self_attention_unit(x, wq, bq, wk, bk, wv, bv)
    out, attn = jax.block_until_ready((out, attn))

    ref_out, ref_attn = reference(x, wq, bq, wk, bk, wv, bv)

    assert out.shape == (batch, seq_len, hidden_dim)
    assert attn.shape == (batch, seq_len, seq_len)
    # Tolerance covers bf16 MXU operands (with f32 accumulation) plus the EUP
    # approximate reciprocal; with f32 operands and approx=False the kernel matches
    # the reference to ~1e-6.
    assert jnp.allclose(out, ref_out, atol=1e-2, rtol=1e-2), \
        float(jnp.max(jnp.abs(out - ref_out)))
    assert jnp.allclose(attn, ref_attn, atol=1e-2, rtol=1e-2), \
        float(jnp.max(jnp.abs(attn - ref_attn)))

    print("KERNEL_OK")
</pallas_src>

<mosaic_0001>
module attributes {stable_mosaic.version = 11 : i64} {
  func.func @_self_attention_kernel(%arg0: i32, %arg1: memref<128x128xbf16, #tpu.memory_space<vmem>>, %arg2: memref<128x384xbf16, #tpu.memory_space<vmem>>, %arg3: memref<1x384xf32, #tpu.memory_space<vmem>>, %arg4: memref<128x128xf32, #tpu.memory_space<vmem>>, %arg5: memref<8x128xf32, #tpu.memory_space<vmem>>) attributes {dimension_semantics = [#tpu.dimension_semantics<parallel>], iteration_bounds = array<i64: 2>, scalar_prefetch = 0 : i64, scratch_operands = 0 : i64, tpu.core_type = #tpu.core_type<tc>, window_params = [{transform_indices = @transform_0, window_bounds = array<i64: 128, 128>}, {pipeline_mode = #tpu.pipeline_mode<synchronous>, transform_indices = @transform_1, window_bounds = array<i64: 128, 384>}, {pipeline_mode = #tpu.pipeline_mode<synchronous>, transform_indices = @transform_2, window_bounds = array<i64: 1, 384>}, {transform_indices = @transform_3, window_bounds = array<i64: 128, 128>}, {transform_indices = @transform_4, window_bounds = array<i64: 8, 128>}]} {
    %c0 = arith.constant 0 : index
    %c0_0 = arith.constant 0 : index
    %0 = vector.load %arg1[%c0, %c0_0] : memref<128x128xbf16, #tpu.memory_space<vmem>>, vector<128x128xbf16>
    %c0_1 = arith.constant 0 : index
    %c0_2 = arith.constant 0 : index
    %1 = vector.load %arg2[%c0_1, %c0_2] : memref<128x384xbf16, #tpu.memory_space<vmem>>, vector<128x384xbf16>
    %cst = arith.constant dense<0.000000e+00> : vector<128x384xf32>
    %2 = tpu.matmul %0, %1, %cst {dimension_numbers = #tpu.dot_dimension_numbers<[1], [0], [0], [1], [0, 0, 1, 1], [], []>} : vector<128x128xbf16>, vector<128x384xbf16>, vector<128x384xf32> -> vector<128x384xf32>
    %c0_3 = arith.constant 0 : index
    %c0_4 = arith.constant 0 : index
    %3 = vector.load %arg3[%c0_3, %c0_4] : memref<1x384xf32, #tpu.memory_space<vmem>>, vector<1x384xf32>
    %4 = vector.broadcast %3 : vector<1x384xf32> to vector<128x384xf32>
    %5 = arith.addf %2, %4 : vector<128x384xf32>
    %6 = vector.extract_strided_slice %5 {offsets = [0, 0], sizes = [128, 128], strides = [1, 1]} : vector<128x384xf32> to vector<128x128xf32>
    %7 = vector.shape_cast %6 : vector<128x128xf32> to vector<16x8x128xf32>
    %8 = arith.truncf %7 : vector<16x8x128xf32> to vector<16x8x128xbf16>
    %9 = vector.extract_strided_slice %5 {offsets = [0, 128], sizes = [128, 128], strides = [1, 1]} : vector<128x384xf32> to vector<128x128xf32>
    %10 = vector.shape_cast %9 : vector<128x128xf32> to vector<16x8x128xf32>
    %11 = arith.truncf %10 : vector<16x8x128xf32> to vector<16x8x128xbf16>
    %12 = vector.extract_strided_slice %5 {offsets = [0, 256], sizes = [128, 128], strides = [1, 1]} : vector<128x384xf32> to vector<128x128xf32>
    %13 = vector.shape_cast %12 : vector<128x128xf32> to vector<16x8x128xf32>
    %14 = arith.truncf %13 : vector<16x8x128xf32> to vector<16x8x128xbf16>
    %cst_5 = arith.constant dense<0.000000e+00> : vector<16x8x8xf32>
    %15 = tpu.matmul %8, %11, %cst_5 {dimension_numbers = #tpu.dot_dimension_numbers<[2], [2], [1], [1], [0, 0, 0, 1, 1, 1], [0], [0]>} : vector<16x8x128xbf16>, vector<16x8x128xbf16>, vector<16x8x8xf32> -> vector<16x8x8xf32>
    %cst_6 = arith.constant 0.0883883461 : f32
    %16 = vector.broadcast %cst_6 : f32 to vector<16x8x8xf32>
    %17 = arith.mulf %15, %16 : vector<16x8x8xf32>
    %18 = arith.negf %17 : vector<16x8x8xf32>
    %19 = math.exp %18 : vector<16x8x8xf32>
    %cst_7 = arith.constant 1.000000e+00 : f32
    %20 = vector.broadcast %cst_7 : f32 to vector<16x8x8xf32>
    %21 = arith.addf %20, %19 : vector<16x8x8xf32>
    %22 = arith.divf %20, %21 : vector<16x8x8xf32>
    %23 = math.exp %22 : vector<16x8x8xf32>
    %cst_8 = arith.constant dense<0.000000e+00> : vector<16x8xf32>
    %24 = vector.multi_reduction <add>, %23, %cst_8 [2] : vector<16x8x8xf32> to vector<16x8xf32>
    %25 = vector.shape_cast %24 : vector<16x8xf32> to vector<16x8x1xf32>
    %26 = tpu.reciprocal %25 {approx = true} : vector<16x8x1xf32> -> vector<16x8x1xf32>
    %27 = vector.broadcast %26 : vector<16x8x1xf32> to vector<16x8x8xf32>
    %28 = arith.mulf %23, %27 : vector<16x8x8xf32>
    %29 = arith.truncf %28 : vector<16x8x8xf32> to vector<16x8x8xbf16>
    %cst_9 = arith.constant dense<0.000000e+00> : vector<16x8x128xf32>
    %30 = tpu.matmul %29, %14, %cst_9 {dimension_numbers = #tpu.dot_dimension_numbers<[2], [1], [1], [2], [0, 0, 0, 1, 1, 2], [0], [0]>} : vector<16x8x8xbf16>, vector<16x8x128xbf16>, vector<16x8x128xf32> -> vector<16x8x128xf32>
    %31 = vector.shape_cast %30 : vector<16x8x128xf32> to vector<128x128xf32>
    %c0_10 = arith.constant 0 : index
    %c0_11 = arith.constant 0 : index
    %32 = vector.load %arg4[%c0_10, %c0_11] : memref<128x128xf32, #tpu.memory_space<vmem>>, vector<128x128xf32>
    tpu.vector_store %arg4[%c0_10, %c0_11], %31 {strides = array<i32>} : memref<128x128xf32, #tpu.memory_space<vmem>>, vector<128x128xf32>,
    %33 = vector.shape_cast %28 : vector<16x8x8xf32> to vector<8x128xf32>
    %c0_12 = arith.constant 0 : index
    %c0_13 = arith.constant 0 : index
    %34 = vector.load %arg5[%c0_12, %c0_13] : memref<8x128xf32, #tpu.memory_space<vmem>>, vector<8x128xf32>
    tpu.vector_store %arg5[%c0_12, %c0_13], %33 {strides = array<i32>} : memref<8x128xf32, #tpu.memory_space<vmem>>, vector<8x128xf32>,
    return
  }
  func.func @transform_0(%arg0: i32) -> (i32, i32) {
    %c0_i32 = arith.constant 0 : i32
    %c0_i32_0 = arith.constant 0 : i32
    return %arg0, %c0_i32 : i32, i32
  }
  func.func @transform_1(%arg0: i32) -> (i32, i32) {
    %c0_i32 = arith.constant 0 : i32
    %c0_i32_0 = arith.constant 0 : i32
    %c0_i32_1 = arith.constant 0 : i32
    return %c0_i32, %c0_i32_0 : i32, i32
  }
  func.func @transform_2(%arg0: i32) -> (i32, i32) {
    %c0_i32 = arith.constant 0 : i32
    %c0_i32_0 = arith.constant 0 : i32
    %c0_i32_1 = arith.constant 0 : i32
    return %c0_i32, %c0_i32_0 : i32, i32
  }
  func.func @transform_3(%arg0: i32) -> (i32, i32) {
    %c0_i32 = arith.constant 0 : i32
    %c0_i32_0 = arith.constant 0 : i32
    return %arg0, %c0_i32 : i32, i32
  }
  func.func @transform_4(%arg0: i32) -> (i32, i32) {
    %c0_i32 = arith.constant 0 : i32
    %c0_i32_0 = arith.constant 0 : i32
    return %arg0, %c0_i32 : i32, i32
  }
}

module attributes {stable_mosaic.version = 11 : i64} {
  func.func @_self_attention_kernel(%arg0: i32, %arg1: memref<128x128xbf16, #tpu.memory_space<vmem>>, %arg2: memref<128x384xbf16, #tpu.memory_space<vmem>>, %arg3: memref<1x384xf32, #tpu.memory_space<vmem>>, %arg4: memref<128x128xf32, #tpu.memory_space<vmem>>, %arg5: memref<128x8xf32, #tpu.memory_space<vmem>>) attributes {dimension_semantics = [#tpu.dimension_semantics<parallel>], iteration_bounds = array<i64: 2>, scalar_prefetch = 0 : i64, scratch_operands = 0 : i64, tpu.core_type = #tpu.core_type<tc>, window_params = [{transform_indices = @transform_0, window_bounds = array<i64: 128, 128>}, {pipeline_mode = #tpu.pipeline_mode<synchronous>, transform_indices = @transform_1, window_bounds = array<i64: 128, 384>}, {pipeline_mode = #tpu.pipeline_mode<synchronous>, transform_indices = @transform_2, window_bounds = array<i64: 1, 384>}, {transform_indices = @transform_3, window_bounds = array<i64: 128, 128>}, {transform_indices = @transform_4, window_bounds = array<i64: 128, 8>}]} {
    %c0 = arith.constant 0 : index
    %c0_0 = arith.constant 0 : index
    %0 = vector.load %arg1[%c0, %c0_0] : memref<128x128xbf16, #tpu.memory_space<vmem>>, vector<128x128xbf16>
    %c0_1 = arith.constant 0 : index
    %c0_2 = arith.constant 0 : index
    %1 = vector.load %arg2[%c0_1, %c0_2] : memref<128x384xbf16, #tpu.memory_space<vmem>>, vector<128x384xbf16>
    %cst = arith.constant dense<0.000000e+00> : vector<128x384xf32>
    %2 = tpu.matmul %0, %1, %cst {dimension_numbers = #tpu.dot_dimension_numbers<[1], [0], [0], [1], [0, 0, 1, 1], [], []>} : vector<128x128xbf16>, vector<128x384xbf16>, vector<128x384xf32> -> vector<128x384xf32>
    %c0_3 = arith.constant 0 : index
    %c0_4 = arith.constant 0 : index
    %3 = vector.load %arg3[%c0_3, %c0_4] : memref<1x384xf32, #tpu.memory_space<vmem>>, vector<1x384xf32>
    %4 = vector.broadcast %3 : vector<1x384xf32> to vector<128x384xf32>
    %5 = arith.addf %2, %4 : vector<128x384xf32>
    %6 = vector.extract_strided_slice %5 {offsets = [0, 0], sizes = [128, 128], strides = [1, 1]} : vector<128x384xf32> to vector<128x128xf32>
    %7 = vector.shape_cast %6 : vector<128x128xf32> to vector<16x8x128xf32>
    %8 = arith.truncf %7 : vector<16x8x128xf32> to vector<16x8x128xbf16>
    %9 = vector.extract_strided_slice %5 {offsets = [0, 128], sizes = [128, 128], strides = [1, 1]} : vector<128x384xf32> to vector<128x128xf32>
    %10 = vector.shape_cast %9 : vector<128x128xf32> to vector<16x8x128xf32>
    %11 = arith.truncf %10 : vector<16x8x128xf32> to vector<16x8x128xbf16>
    %12 = vector.extract_strided_slice %5 {offsets = [0, 256], sizes = [128, 128], strides = [1, 1]} : vector<128x384xf32> to vector<128x128xf32>
    %13 = vector.shape_cast %12 : vector<128x128xf32> to vector<16x8x128xf32>
    %14 = arith.truncf %13 : vector<16x8x128xf32> to vector<16x8x128xbf16>
    %cst_5 = arith.constant dense<0.000000e+00> : vector<16x8x8xf32>
    %15 = tpu.matmul %8, %11, %cst_5 {dimension_numbers = #tpu.dot_dimension_numbers<[2], [2], [1], [1], [0, 0, 0, 1, 1, 1], [0], [0]>} : vector<16x8x128xbf16>, vector<16x8x128xbf16>, vector<16x8x8xf32> -> vector<16x8x8xf32>
    %cst_6 = arith.constant 0.0883883461 : f32
    %16 = vector.broadcast %cst_6 : f32 to vector<16x8x8xf32>
    %17 = arith.mulf %15, %16 : vector<16x8x8xf32>
    %18 = arith.negf %17 : vector<16x8x8xf32>
    %19 = math.exp %18 : vector<16x8x8xf32>
    %cst_7 = arith.constant 1.000000e+00 : f32
    %20 = vector.broadcast %cst_7 : f32 to vector<16x8x8xf32>
    %21 = arith.addf %20, %19 : vector<16x8x8xf32>
    %22 = arith.divf %20, %21 : vector<16x8x8xf32>
    %23 = math.exp %22 : vector<16x8x8xf32>
    %cst_8 = arith.constant dense<0.000000e+00> : vector<16x8xf32>
    %24 = vector.multi_reduction <add>, %23, %cst_8 [2] : vector<16x8x8xf32> to vector<16x8xf32>
    %25 = vector.shape_cast %24 : vector<16x8xf32> to vector<16x8x1xf32>
    %26 = tpu.reciprocal %25 {approx = true} : vector<16x8x1xf32> -> vector<16x8x1xf32>
    %27 = vector.broadcast %26 : vector<16x8x1xf32> to vector<16x8x8xf32>
    %28 = arith.mulf %23, %27 : vector<16x8x8xf32>
    %29 = arith.truncf %28 : vector<16x8x8xf32> to vector<16x8x8xbf16>
    %cst_9 = arith.constant dense<0.000000e+00> : vector<16x8x128xf32>
    %30 = tpu.matmul %29, %14, %cst_9 {dimension_numbers = #tpu.dot_dimension_numbers<[2], [1], [1], [2], [0, 0, 0, 1, 1, 2], [0], [0]>} : vector<16x8x8xbf16>, vector<16x8x128xbf16>, vector<16x8x128xf32> -> vector<16x8x128xf32>
    %31 = vector.shape_cast %30 : vector<16x8x128xf32> to vector<128x128xf32>
    %c0_10 = arith.constant 0 : index
    %c0_11 = arith.constant 0 : index
    %32 = vector.load %arg4[%c0_10, %c0_11] : memref<128x128xf32, #tpu.memory_space<vmem>>, vector<128x128xf32>
    tpu.vector_store %arg4[%c0_10, %c0_11], %31 {strides = array<i32>} : memref<128x128xf32, #tpu.memory_space<vmem>>, vector<128x128xf32>,
    %33 = vector.shape_cast %28 : vector<16x8x8xf32> to vector<128x8xf32>
    %c0_12 = arith.constant 0 : index
    %c0_13 = arith.constant 0 : index
    %34 = vector.load %arg5[%c0_12, %c0_13] : memref<128x8xf32, #tpu.memory_space<vmem>>, vector<128x8xf32>
    tpu.vector_store %arg5[%c0_12, %c0_13], %33 {strides = array<i32>} : memref<128x8xf32, #tpu.memory_space<vmem>>, vector<128x8xf32>,
    return
  }
  func.func @transform_0(%arg0: i32) -> (i32, i32) {
    %c0_i32 = arith.constant 0 : i32
    %c0_i32_0 = arith.constant 0 : i32
    return %arg0, %c0_i32 : i32, i32
  }
  func.func @transform_1(%arg0: i32) -> (i32, i32) {
    %c0_i32 = arith.constant 0 : i32
    %c0_i32_0 = arith.constant 0 : i32
    %c0_i32_1 = arith.constant 0 : i32
    return %c0_i32, %c0_i32_0 : i32, i32
  }
  func.func @transform_2(%arg0: i32) -> (i32, i32) {
    %c0_i32 = arith.constant 0 : i32
    %c0_i32_0 = arith.constant 0 : i32
    %c0_i32_1 = arith.constant 0 : i32
    return %c0_i32, %c0_i32_0 : i32, i32
  }
  func.func @transform_3(%arg0: i32) -> (i32, i32) {
    %c0_i32 = arith.constant 0 : i32
    %c0_i32_0 = arith.constant 0 : i32
    return %arg0, %c0_i32 : i32, i32
  }
  func.func @transform_4(%arg0: i32) -> (i32, i32) {
    %c0_i32 = arith.constant 0 : i32
    %c0_i32_0 = arith.constant 0 : i32
    return %arg0, %c0_i32 : i32, i32
  }
}

</mosaic_0001>

<bundles_post_ra>
// kernel: tpu_custom_call.1
= control target key start
LH: loop header
LB: loop body
LE: loop exit
PB: predicated region body
PF: predicated region fallthrough
CT: control target
= control target key end

     0   :  { %10 = vsyncpa [#allocation3], 0  ;;  %s3921_s0 = inlined_call_operand.hbm [shape: bf16[256,128], index: 0, kind: input, shape index: {}]   ;;  %s3922_s1 = inlined_call_operand.hbm [shape: bf16[128,384], index: 1, kind: input, shape index: {}]   ;;  %s3923_s2 = inlined_call_operand.vmem [shape: f32[1,384], index: 2, kind: input, shape index: {}]   ;;  %s3924_s3 = inlined_call_operand.hbm [shape: f32[256,128], index: 3, kind: output, shape index: {0}]   ;;  %s3925_s4 = inlined_call_operand.vmem [shape: f32[256,8], index: 4, kind: output, shape index: {1}]  }
   0x1   :  { %12 = vsyncpa [#allocation3 + $0x1], 0 }
   0x2   :  { %13 = vsyncpa [#allocation6], 0 }
   0x3   :  { %14 = vsyncpa [#allocation4], 0 }
   0x4   :  { %16 = vsyncpa [#allocation4 + $0x1], 0  ;;  %s3317_s15 = smov 0   ;;  %s3319_s16 = smov 0  }
   0x5   :  { %s3321_s17 = smov 0   ;;  %s3323_s18 = smov 0  }
   0x6 LB: > { %s3338_s19 = sadd.s32 4294967295, %s3278_s18   ;;  %s2528_s20 = sadd.s32 4294967294, %s3278_s18   ;;  %s3278_s18 = sphi %s3323_s18, %s3945_s18   ;;  %s3274_s17 = sphi %s3321_s17, %s3944_s17   ;;  %s3270_s16 = sphi %s3319_s16, %s3943_s16   ;;  %s3266_s15 = sphi %s3317_s15, %s3942_s15  }
   0x7   : > { %p42_p0 = scmp.ne.s32.totalorder %s3270_s16, %s3266_s15  ;;  %p3926_p1 = scmp.eq.s32.totalorder %s3338_s19, 0 }
   0x8   : > { %p114_p3 = scmp.eq.s32.totalorder %s2528_s20, 1  ;;  %p2529_p5 = scmp.ge.s32.totalorder %s3278_s18, 1 }
   0x9   : > { %p3347_p4 = por %p3926_p1, %p42_p0  ;;  %p147_p7 = scmp.lt.s32.totalorder %s3278_s18, 3 }
   0xa   : > { %p3352_p6 = por %p114_p3, %p42_p0  ;;  %s3280_s24 = smov [#allocation5]  }
   0xb   : > { %s3929_s21 = scalar_select %p3347_p4, 1, 0 }
   0xc   : > { %s3930_s22 = scalar_select %p3352_p6, 1, 0 }
   0xd   : > { %p3357_p8 = pnand %p2529_p5, %p147_p7  ;;  %s159_s25 = sshll.u32 %s3280_s24, 4  ;;  %s3361_s25 = int_to_ptr.vmem [resolvable:$true] %s159_s25 }
   0xe   : > { %s3373_s27 = sadd.s32 1, %s3278_s18   ;;  %s29_s28 = sadd.s32 1, %s3274_s17 }
   0xf   : > { %s3931_s23 = scalar_select %p3357_p8, 1, 0 }
  0x10   : > { %p2924_p9 = pneg %p3357_p8  ;;  %s26_s29 = ssub.s32 %s3278_s18, %s3373_s27 }
  0x11   : > { %s3150_s6 = scalar_lea.hbm %s3922_s1, 3072 }
  0x12   : > { %p3368_p11 = pnand %p2924_p9, %p3926_p1  ;;  %p3151_p12 = scmp.ne.s32.totalorder %s3922_s1, %s3150_s6 }
  0x13   : > { %p3157_p5 = scmp.lt.u32.totalorder %s3150_s6, %s3922_s1 }
  0x14   : > { %p3152_p13 = pneg %p3368_p11 }
  0x16   : > { %p3153_p0 = pnand %p3152_p13, %p3151_p12 }
  0x18   : > { %p3154_p3 = pneg %p3153_p0 }
  0x1a   : > { %p3159_p7 = pnand %p3157_p5, %p3154_p3 }
  0x1c   : > { %3162 = shalt.err (!%p3159_p7)
}
  0x1d   : > { %s3163_s11 = scalar_lea.vmem %s3361_s25, 3072  ;;  %p3171_p2 = scmp.lt.s32.totalorder %s3361_s25, %s3361_s25 }
  0x1e   : > { %p3164_p9 = scmp.ne.s32.totalorder %s3361_s25, %s3163_s11  ;;  %p3172_p6 = scmp.lt.s32.totalorder %s3163_s11, %s3163_s11 }
  0x20   : > { %p3166_p10 = pnand %p3164_p9, %p3152_p13  ;;  %p3173_p4 = por %p3172_p6, %p3171_p2 }
  0x22   : > { %p3167_p1 = pneg %p3166_p10 }
  0x24   : > { %p3174_p8 = pnand %p3173_p4, %p3167_p1 }
  0x26   : > { %3177 = shalt.err (!%p3174_p8)
}
  0x27   : > { %s3281_s12 = smov 192   ;;  %s3282_s13 = smov 12  }
  0x28   : > { %2927 = dma.hbm_to_vmem [thread:$0]  (!%p3368_p11), %s3922_s1, 3072, %s3361_s25, [#allocation6], %s3281_s12, %s3281_s12, %s3282_s13  }
  0x29   : > { %p27_p2 = scmp.eq.s32.totalorder %s26_s29, 0  ;;  %p36_p1 = scmp.ne.s32.totalorder %s3274_s17, %s3270_s16 }
  0x2a   : > { %p37_p4 = scmp.eq.s32.totalorder %s3278_s18, 0  ;;  %p2937_p6 = scmp.lt.s32.totalorder %s3278_s18, 2 }
  0x2b   : > { %s3404_s24 = scalar_select %p27_p2, %s3274_s17, %s29_s28  }
  0x2c   : > { %p38_p8 = por %p37_p4, %p36_p1  ;;  %p3933_p10 = scmp.eq.s32.totalorder %s3338_s19, 1 }
  0x2d   : > { %s176_s5 = sand.u32 1, %s3274_s17   ;;  %s2610_s6 = sshll.u32 %s3278_s18, 10 }
  0x2e   : > { %p3408_p12 = por %p3933_p10, %p36_p1  ;;  %s2532_s7 = sshll.u32 %s176_s5, 6 }
  0x2f   : > { %s3417_s9 = scalar_lea.hbm %s3921_s0, %s2610_s6  ;;  %s180_s25 = scalar_lea.vmem [#allocation2], %s2532_s7 }
  0x30   : > { %s187_s28 = sshll.u32 %s180_s25, 4  ;;  %p3419_p11 = pnand %p2937_p6, %p38_p8  ;;  %s3423_s28 = int_to_ptr.vmem [resolvable:$true] %s187_s28 }
  0x31   : > { %s3425_s10 = scalar_lea.sflag [#allocation3], %s176_s5  ;;  %s3178_s11 = scalar_lea.hbm %s3417_s9, 1024 }
  0x32   : > { %p3179_p13 = scmp.ne.s32.totalorder %s3417_s9, %s3178_s11  ;;  %p3180_p0 = pneg %p3419_p11 }
  0x33   : > { %s3183_s14 = scalar_lea.hbm %s3921_s0, 2048  ;;  %p3184_p7 = scmp.lt.u32.totalorder %s3417_s9, %s3921_s0 }
  0x34   : > { %p3181_p3 = pnand %p3180_p0, %p3179_p13  ;;  %p3185_p9 = scmp.lt.u32.totalorder %s3183_s14, %s3178_s11 }
  0x35   : > { %p3187_p1 = scmp.lt.u32.totalorder %s3178_s11, %s3417_s9 }
  0x36   : > { %p3182_p5 = pneg %p3181_p3  ;;  %p3186_p2 = por %p3185_p9, %p3184_p7 }
  0x38   : > { %p3188_p4 = por %p3187_p1, %p3186_p2 }
  0x3a   : > { %p3189_p6 = pnand %p3188_p4, %p3182_p5 }
  0x3c   : > { %3192 = shalt.err (!%p3189_p6)
}
  0x3d   : > { %s3193_s5 = scalar_lea.vmem %s3423_s28, 1024  ;;  %s3283_s7 = smov [#allocation2]  }
  0x3e   : > { %p3194_p8 = scmp.ne.s32.totalorder %s3423_s28, %s3193_s5  ;;  %s3198_s26 = sshll.u32 %s3283_s7, 4  ;;  %s3199_s26 = int_to_ptr.vmem [resolvable:$false] %s3198_s26 }
  0x3f   : > { %s3200_s8 = scalar_lea.vmem %s3199_s26, 2048  ;;  %p3201_p3 = scmp.lt.s32.totalorder %s3423_s28, %s3199_s26 }
  0x40   : > { %p3196_p10 = pnand %p3194_p8, %p3180_p0  ;;  %p3202_p7 = scmp.lt.s32.totalorder %s3200_s8, %s3193_s5 }
  0x42   : > { %p3197_p13 = pneg %p3196_p10  ;;  %p3203_p9 = por %p3202_p7, %p3201_p3 }
  0x44   : > { %p3204_p2 = pnand %p3203_p9, %p3197_p13 }
  0x46   : > { %3207 = shalt.err (!%p3204_p2)
}
  0x47   : > { %s3284_s25 = smov 64   ;;  %s3285_s11 = smov 4  }
  0x48   : > { %2931 = dma.hbm_to_vmem [thread:$0]  (!%p3419_p11), %s3417_s9, 1024, %s3423_s28, %s3425_s10, %s3284_s25, %s3284_s25, %s3285_s11  }
  0x49   : > { %p3936_p0 = scmp.ne.s32.totalorder %s3931_s23, 0 }
  0x4a   : > { %s3456_s12 = sand.u32 (!%p3936_p0), 1, %s3270_s16   ;;  %p3937_p5 = scmp.ne.s32.totalorder (!%p3936_p0), %s3929_s21, 0 }
  0x4b   : > { %199 = sbr.rel (%p3936_p0) target bundleno = 1054 (0x41e), region = 32  ;;  %s2536_s13 = sshll.u32 (!%p3936_p0), %s3456_s12, 6 }
  0x4c   : > { %s202_s14 = scalar_lea.sflag (!%p3936_p0), [#allocation3], %s3456_s12  ;;  %s3460_s20 = scalar_lea.vmem (!%p3936_p0), [#allocation2], %s2536_s13 }
  0x52   : > { %3253 = dma.done.wait (%p3937_p5), %s202_s14, 1024  }
  0x53   : > { %3255 = vsyncadd (%p3937_p5), %s202_s14, 4294966272  ;;  %p3938_p11 = scmp.eq.s32.totalorder %s3338_s19, 0 }
  0x55   : > { %3257 = dma.done.wait (%p3938_p11), [#allocation6], 3072   ;;  %p3939_p1 = pmov %p3938_p11 }
  0x56   : > { %v3286_v0 = vmov 0   ;;  %v2982_v1 = vld [vmem:[#allocation5 + $0x4] ss:$12 sps:$4 sm:$0xff]   ;;  %v2984_v2 = vld [vmem:[#allocation5] ss:$12 sps:$4 sm:$0xff]   ;;  %v3009_v28 = vld [vmem:[%s3460_s20 + $0x18] sm:$0xff]   ;;  %v298_v34 = vlaneseq }
  0x57   : > { %3259 = vsyncadd (%p3939_p1), [#allocation6], 4294964224  ;;  %521 = vmatprep.mubr.bf16.mxu0 %v3286_v0  ;;  %489 = vmatprep.subr.bf16.mxu0 %v2982_v1  ;;  %v2985_v3 = vld [vmem:[#allocation5 + $0x1c] ss:$12 sps:$4 sm:$0xff]   ;;  %v2987_v4 = vld [vmem:[#allocation5 + $0x18] ss:$12 sps:$4 sm:$0xff]  }
  0x58   : > { %490 = vmatpush1.bf16.msra.mxu0 %v2984_v2  ;;  %v2988_v5 = vld [vmem:[#allocation5 + $0x34] ss:$12 sps:$4 sm:$0xff]   ;;  %v2990_v6 = vld [vmem:[#allocation5 + $0x30] ss:$12 sps:$4 sm:$0xff]   ;;  %v2991_v7 = vld [vmem:[#allocation5 + $0x4c] ss:$12 sps:$4 sm:$0xff]  }
  0x59   : > { %491 = vmatprep.subr.bf16.mxu0 %v2985_v3  ;;  %v2993_v8 = vld [vmem:[#allocation5 + $0x48] ss:$12 sps:$4 sm:$0xff]   ;;  %v3006_v9 = vld [vmem:[%s3460_s20] sm:$0xff]   ;;  %v3002_v17 = vld [vmem:[#allocation5 + $0x90] ss:$12 sps:$4 sm:$0xff]   ;;  %v3287_v33 = vmov 0.0  }
  0x5a   : > { %v2994_v10 = vld [vmem:[#allocation5 + $0x64] ss:$12 sps:$4 sm:$0xff]   ;;  %2708 = vmatprep.mubr.bf16.mxu1 %v3006_v9  ;;  %v2996_v11 = vld [vmem:[#allocation5 + $0x60] ss:$12 sps:$4 sm:$0xff]   ;;  %v2997_v12 = vld [vmem:[#allocation5 + $0x7c] ss:$12 sps:$4 sm:$0xff]  }
  0x5b   : > { %v2999_v13 = vld [vmem:[#allocation5 + $0x78] ss:$12 sps:$4 sm:$0xff]   ;;  %v3000_v14 = vld [vmem:[#allocation5 + $0x94] ss:$12 sps:$4 sm:$0xff]   ;;  %v3017_v21 = vld [vmem:[#allocation5 + $0x50] ss:$12 sps:$4 sm:$0xff]  }
  0x5c   : > { %492 = vmatpush1.bf16.msra.mxu0 %v2987_v4  ;;  %v3014_v15 = vld [vmem:[#allocation5 + $0x8] ss:$12 sps:$4 sm:$0xff]   ;;  %v3015_v16 = vld [vmem:[#allocation5 + $0x20] ss:$12 sps:$4 sm:$0xff]   ;;  %v3016_v18 = vld [vmem:[#allocation5 + $0x38] ss:$12 sps:$4 sm:$0xff]  }
  0x5d   : > { %493 = vmatprep.subr.bf16.mxu0 %v2988_v5  ;;  %2692 = vmatprep.subr.bf16.mxu1 %v3014_v15  ;;  %v3003_v19 = vld [vmem:[#allocation5 + $0xac] ss:$12 sps:$4 sm:$0xff]   ;;  %v3005_v20 = vld [vmem:[#allocation5 + $0xa8] ss:$12 sps:$4 sm:$0xff]   ;;  %v3021_v26 = vld [vmem:[#allocation5 + $0xb0] ss:$12 sps:$4 sm:$0xff]  }
  0x5e   : > { %2693 = vmatpush3.bf16.msra.mxu1 %v3014_v15  ;;  %v3018_v22 = vld [vmem:[#allocation5 + $0x68] ss:$12 sps:$4 sm:$0xff]   ;;  %v3019_v23 = vld [vmem:[#allocation5 + $0x80] ss:$12 sps:$4 sm:$0xff]   ;;  %v3020_v25 = vld [vmem:[#allocation5 + $0x98] ss:$12 sps:$4 sm:$0xff]  }
  0x5f   : > { %2694 = vmatprep.subr.bf16.mxu1 %v3015_v16  ;;  %v3007_v24 = vld [vmem:[%s3460_s20 + $0x8] sm:$0xff]   ;;  %v3008_v27 = vld [vmem:[%s3460_s20 + $0x10] sm:$0xff]   ;;  %v3010_v29 = vld [vmem:[%s3460_s20 + $0x20] sm:$0xff]   ;;  %vm3288_vm0 = vmmov 0   ;;  %v299_v35 = vshrl.u32 %v298_v34, 7  ;;  %vm1631_vm1 = vcmask 1043456  }
  0x60   : > { %494 = vmatpush1.bf16.msra.mxu0 %v2990_v6  ;;  %v3011_v30 = vld [vmem:[%s3460_s20 + $0x28] sm:$0xff]   ;;  %v3012_v31 = vld [vmem:[%s3460_s20 + $0x30] sm:$0xff]   ;;  %v3013_v32 = vld [vmem:[%s3460_s20 + $0x38] sm:$0xff]   ;;  %vm1531_vm2 = vcmask 64512   ;;  %s2539_s9 = sshll.u32 %s3338_s19, 4  ;;  %s2538_s5 = sshll.u32 %s3456_s12, 7 }
  0x61   : > { %495 = vmatprep.subr.bf16.mxu0 %v2991_v7  ;;  %v308_v36 = vsub.s32 2, %v299_v35  ;;  %v296_v37 = vld [vmem:[%s3923_s2] sm:$0x7]  ;;  %v304_v39 = vsub.s32 1, %v299_v35  ;;  %v300_v41 = vsub.s32 0, %v299_v35  ;;  %p242_p4 = scmp.lt.s32.totalorder %s2539_s9, 31 }
  0x62   : > { %2695 = vmatpush3.bf16.msra.mxu1 %v3015_v16  ;;  %s3852_s7 = scalar_lea.vmem [#allocation7], %s2538_s5  ;;  %s2611_s26 = sshll.u32 %s3338_s19, 11 }
  0x63   : > { %2696 = vmatprep.subr.bf16.mxu1 %v3016_v18  ;;  %v3495_v38 = vrot.slane %v296_v37, %v308_v36  ;;  %v3497_v40 = vrot.slane %v296_v37, %v304_v39  ;;  %v3500_v46 = vrot.slane %v296_v37, %v300_v41  ;;  %s3947_s9 = smov (!%p242_p4, %s2539_s9), 31  ;;  %s2416_s8 = sshll.u32 %s3852_s7, 4  ;;  %s3876_s8 = int_to_ptr.vmem [resolvable:$true] %s2416_s8 }
  0x64   : > { %496 = vmatpush1.bf16.msra.mxu0 %v2993_v8  ;;  %s2540_s28 = sshll.u32 %s3947_s9, 3  ;;  %s3874_s13 = scalar_lea.hbm %s3924_s3, %s2611_s26 }
  0x65   : > { %497 = vmatprep.subr.bf16.mxu0 %v2994_v10  ;;  %s3731_s6 = scalar_lea.vmem %s3925_s4, %s2540_s28  ;;  %s2398_s14 = scalar_lea.sflag [#allocation4], %s3456_s12 }
  0x66   : > { %2697 = vmatpush3.bf16.msra.mxu1 %v3016_v18  ;;  %s3208_s20 = scalar_lea.vmem %s3876_s8, 2048  ;;  %s3289_s19 = smov [#allocation7]  }
  0x67   : > { %2698 = vmatprep.subr.bf16.mxu1 %v3017_v21  ;;  %p3209_p6 = scmp.ne.s32.totalorder %s3876_s8, %s3208_s20  ;;  %s3212_s21 = sshll.u32 %s3289_s19, 4  ;;  %s3213_s21 = int_to_ptr.vmem [resolvable:$false] %s3212_s21 }
  0x68   : > { %498 = vmatpush1.bf16.msra.mxu0 %v2996_v11  ;;  %s3214_s23 = scalar_lea.vmem %s3213_s21, 4096  ;;  %p3215_p13 = scmp.lt.s32.totalorder %s3876_s8, %s3213_s21 }
  0x69   : > { %499 = vmatprep.subr.bf16.mxu0 %v2997_v12  ;;  %p3210_p8 = pnand %p3209_p6, %p3408_p12  ;;  %p3216_p3 = scmp.lt.s32.totalorder %s3214_s23, %s3208_s20 }
  0x6a   : > { %2699 = vmatpush3.bf16.msra.mxu1 %v3017_v21 }
  0x6b   : > { %2700 = vmatprep.subr.bf16.mxu1 %v3018_v22  ;;  %p3211_p10 = pneg %p3210_p8  ;;  %p3217_p7 = por %p3216_p3, %p3215_p13 }
  0x6c   : > { %500 = vmatpush1.bf16.msra.mxu0 %v2999_v13 }
  0x6d   : > { %501 = vmatprep.subr.bf16.mxu0 %v3000_v14  ;;  %p3218_p9 = pnand %p3217_p7, %p3211_p10 }
  0x6e   : > { %2701 = vmatpush3.bf16.msra.mxu1 %v3018_v22 }
  0x6f   : > { %2702 = vmatprep.subr.bf16.mxu1 %v3019_v23 }
  0x70   : > { %502 = vmatpush1.bf16.msra.mxu0 %v3002_v17 }
  0x71   : > { %503 = vmatprep.subr.bf16.mxu0 %v3003_v19 }
  0x72   : > { %2703 = vmatpush3.bf16.msra.mxu1 %v3019_v23 }
  0x73   : > { %2704 = vmatprep.subr.bf16.mxu1 %v3020_v25 }
  0x74   : > { %504 = vmatpush1.bf16.msra.mxu0 %v3005_v20 }
  0x75   : > { %2748 = vmatprep.subr.bf16.mxu0 %v3287_v33 }
  0x76   : > { %2705 = vmatpush3.bf16.msra.mxu1 %v3020_v25 }
  0x77   : > { %522 = vmatmul.mubr.bf16.vlgmr.msra.gmra.mrb[0].mxu0 %v3006_v9  ;;  %2706 = vmatprep.subr.bf16.mxu1 %v3021_v26 }
  0x78   : > { %531 = vmatprep.mubr.bf16.mxu0 %v3286_v0 }
  0x7a   : > { %2707 = vmatpush3.bf16.msra.mxu1 %v3021_v26 }
  0x7b   : > { %2724 = vmatprep.subr.bf16.mxu1 %v3287_v33 }
  0x7d   : > { %2709 = vmatmul.mubr.bf16.vlgmr.msra.gmra.mrb[0].mxu1 %v3007_v24 }
  0x7e   : > { %2712 = vmatprep.mubr.bf16.mxu1 %v3008_v27 }
  0x7f   : > { %532 = vmatmul.mubr.bf16.gmra.mrb[4].mxu0 %v3007_v24 }
  0x80   : > { %541 = vmatprep.mubr.bf16.mxu0 %v3286_v0 }
  0x85   : > { %2713 = vmatmul.mubr.bf16.gmra.mrb[4].mxu1 %v3009_v28 }
  0x86   : > { %2716 = vmatprep.mubr.bf16.mxu1 %v3010_v29 }
  0x87   : > { %542 = vmatmul.mubr.bf16.gmra.mrb[8].mxu0 %v3008_v27 }
  0x88   : > { %551 = vmatprep.mubr.bf16.mxu0 %v3286_v0 }
  0x8d   : > { %2717 = vmatmul.mubr.bf16.gmra.mrb[8].mxu1 %v3011_v30 }
  0x8e   : > { %2720 = vmatprep.mubr.bf16.mxu1 %v3012_v31 }
  0x8f   : > { %552 = vmatmul.mubr.bf16.gmra.mrb[12].mxu0 %v3009_v28 }
  0x90   : > { %561 = vmatprep.mubr.bf16.mxu0 %v3286_v0 }
  0x95   : > { %2721 = vmatmul.mubr.bf16.gmra.mrb[12].mxu1 %v3013_v32 }
  0x96   : > { %2726 = vmatprep.mubr.msk.bf16.mxu1 %vm3288_vm0, %v3287_v33 }
  0x97   : > { %562 = vmatmul.mubr.bf16.gmra.mrb[16].mxu0 %v3010_v29 }
  0x98   : > { %571 = vmatprep.mubr.bf16.mxu0 %v3286_v0 }
  0x9f   : > { %572 = vmatmul.mubr.bf16.gmra.mrb[20].mxu0 %v3011_v30 }
  0xa0   : > { %581 = vmatprep.mubr.bf16.mxu0 %v3286_v0 }
  0xa7   : > { %582 = vmatmul.mubr.bf16.gmra.mrb[24].mxu0 %v3012_v31 }
  0xa8   : > { %591 = vmatprep.mubr.bf16.mxu0 %v3286_v0 }
  0xaf   : > { %592 = vmatmul.mubr.bf16.gmra.mrb[28].mxu0 %v3013_v32 }
  0xb0   : > { %2750 = vmatprep.mubr.msk.bf16.mxu0 %vm3288_vm0, %v3287_v33 }
 0x14a   : > { %v523_v42 = vpop.f32.mrb[0].mxu0 }
 0x14b   : > { %v525_v43 = vpop.f32.mrb[1].mxu0  ;;  %v524_v49 = vadd.f32 %v523_v42, %v3500_v46 }
 0x14c   : > { %v526_v44 = vadd.f32 %v525_v43, %v3497_v40  ;;  %v527_v45 = vpop.f32.mrb[2].mxu0 }
 0x14d   : > { %v529_v47 = vpop.f32.mrb[3].mxu0  ;;  %v699_v54 = vpack.c.bf16 %v524_v49, %v524_v49  ;;  %v528_v58 = vadd.f32 %v527_v45, %v3500_v46 }
 0x14e   : > { %v715_v48 = vpack.c.bf16 %v526_v44, %v526_v44  ;;  %v530_v50 = vadd.f32 %v529_v47, %v3497_v40 }
 0x14f   : > { %v700_v0 = vpack.c.bf16 %v528_v58, %v528_v58 }
 0x150   : > { %2725 = vmatpush3.bf16.xpose.msra.mxu1 %v715_v48  ;;  %v716_v56 = vpack.c.bf16 %v530_v50, %v530_v50  ;;  %v2710_v2 = vpop.f32.mrb[0].mxu1 }
 0x151   : > { %2730 = vmatprep.subr.bf16.mxu1 %v3287_v33  ;;  %v645_v4 = vadd.f32 %v2710_v2, %v3495_v38  ;;  %v636_v5 = vpop.f32.mrb[1].mxu1 }
 0x152   : > { %v533_v51 = vpop.f32.mrb[4].mxu0  ;;  %v3516_v7 = vadd.f32 %v636_v5, %v3495_v38  ;;  %v2711_v8 = vpop.f32.mrb[2].mxu1 }
 0x153   : > { %v535_v52 = vpop.f32.mrb[5].mxu0  ;;  %v733_v9 = vpack.c.bf16 %v645_v4, %v645_v4  ;;  %v648_v10 = vadd.f32 %v2711_v8, %v3495_v38  ;;  %v639_v11 = vpop.f32.mrb[3].mxu1  ;;  %v534_v12 = vadd.f32 %v533_v51, %v3500_v46 }
 0x154   : > { %v537_v53 = vpop.f32.mrb[6].mxu0  ;;  %v536_v57 = vadd.f32 %v535_v52, %v3497_v40  ;;  %v3524_v13 = vadd.f32 %v639_v11, %v3495_v38 }
 0x155   : > { %v539_v55 = vpop.f32.mrb[7].mxu0  ;;  %v3529_v16 = vsel %vm1631_vm1, %v733_v9, 0  ;;  %v734_v17 = vpack.c.bf16 %v648_v10, %v648_v10  ;;  %v701_v23 = vpack.c.bf16 %v534_v12, %v534_v12  ;;  %v538_v37 = vadd.f32 %v537_v53, %v3500_v46 }
 0x156   : > { %v717_v61 = vpack.c.bf16 %v536_v57, %v536_v57  ;;  %v540_v14 = vadd.f32 %v539_v55, %v3497_v40 }
 0x157   : > { %2727 = vmatmul.mubr.bf16.vlgmr.msra.gmra.mrb[16].mxu1 %v699_v54  ;;  %v3535_v22 = vsel %vm1631_vm1, %v734_v17, 0  ;;  %v702_v54 = vpack.c.bf16 %v538_v37, %v538_v37 }
 0x158   : > { %2731 = vmatpush3.bf16.xpose.msra.mxu1 %v716_v56  ;;  %2732 = vmatprep.mubr.msk.bf16.mxu1 %vm3288_vm0, %v3287_v33  ;;  %v2714_v25 = vpop.f32.mrb[4].mxu1  ;;  %v718_v26 = vpack.c.bf16 %v540_v14, %v540_v14 }
 0x159   : > { %2736 = vmatprep.subr.bf16.mxu1 %v3287_v33  ;;  %v661_v28 = vadd.f32 %v2714_v25, %v3495_v38  ;;  %v652_v29 = vpop.f32.mrb[5].mxu1 }
 0x15a   : > { %v543_v59 = vpop.f32.mrb[8].mxu0  ;;  %v653_v31 = vadd.f32 %v652_v29, %v3495_v38  ;;  %v2715_v32 = vpop.f32.mrb[6].mxu1 }
 0x15b   : > { %v545_v60 = vpop.f32.mrb[9].mxu0  ;;  %v544_v6 = vadd.f32 %v543_v59, %v3500_v46  ;;  %v737_v34 = vpack.c.bf16 %v661_v28, %v661_v28  ;;  %v664_v35 = vadd.f32 %v2715_v32, %v3495_v38  ;;  %v655_v36 = vpop.f32.mrb[7].mxu1 }
 0x15c   : > { %v546_v62 = vadd.f32 %v545_v60, %v3497_v40  ;;  %v3511_v63 = vpop.f32.mrb[10].mxu0  ;;  %v735_v39 = vpack.c.bf16 %v653_v31, %v653_v31  ;;  %v656_v41 = vadd.f32 %v655_v36, %v3495_v38 }
 0x15d   : > { %v549_v1 = vpop.f32.mrb[11].mxu0  ;;  %v703_v18 = vpack.c.bf16 %v544_v6, %v544_v6  ;;  %v3551_v44 = vsel %vm1631_vm1, %v737_v34, 0  ;;  %v738_v45 = vpack.c.bf16 %v664_v35, %v664_v35  ;;  %v548_v5 = vadd.f32 %v3511_v63, %v3500_v46 }
 0x15e   : > { %v719_v3 = vpack.c.bf16 %v546_v62, %v546_v62  ;;  %v550_v42 = vadd.f32 %v549_v1, %v3497_v40  ;;  %v3554_v49 = vsel %vm1631_vm1, %v735_v39, 0  ;;  %v736_v50 = vpack.c.bf16 %v656_v41, %v656_v41 }
 0x15f   : > { %2733 = vmatmul.mubr.bf16.vlgmr.msra.gmra.mrb[20].mxu1 %v700_v0  ;;  %v3560_v53 = vsel %vm1631_vm1, %v738_v45, 0 }
 0x160   : > { %2737 = vmatpush3.bf16.xpose.msra.mxu1 %v717_v61  ;;  %2749 = vmatpush3.bf16.xpose.msra.mxu0 %v719_v3  ;;  %v3563_v56 = vsel %vm1631_vm1, %v736_v50, 0  ;;  %v2718_v57 = vpop.f32.mrb[8].mxu1  ;;  %v720_v58 = vpack.c.bf16 %v550_v42, %v550_v42 }
 0x161   : > { %2738 = vmatprep.mubr.msk.bf16.mxu1 %vm3288_vm0, %v3287_v33  ;;  %2742 = vmatprep.subr.bf16.mxu1 %v3287_v33  ;;  %v677_v60 = vadd.f32 %v2718_v57, %v3495_v38  ;;  %v668_v61 = vpop.f32.mrb[9].mxu1 }
 0x162   : > { %v553_v15 = vpop.f32.mrb[12].mxu0  ;;  %2760 = vmatprep.subr.bf16.mxu0 %v3287_v33  ;;  %v669_v0 = vadd.f32 %v668_v61, %v3495_v38  ;;  %v2719_v1 = vpop.f32.mrb[10].mxu1 }
 0x163   : > { %v555_v19 = vpop.f32.mrb[13].mxu0  ;;  %v554_v30 = vadd.f32 %v553_v15, %v3500_v46  ;;  %v741_v2 = vpack.c.bf16 %v677_v60, %v677_v60  ;;  %v680_v3 = vadd.f32 %v2719_v1, %v3495_v38  ;;  %v671_v4 = vpop.f32.mrb[11].mxu1 }
 0x164   : > { %v556_v20 = vadd.f32 %v555_v19, %v3497_v40  ;;  %v3532_v21 = vpop.f32.mrb[14].mxu0  ;;  %v739_v6 = vpack.c.bf16 %v669_v0, %v669_v0  ;;  %v672_v8 = vadd.f32 %v671_v4, %v3495_v38 }
 0x165   : > { %v559_v24 = vpop.f32.mrb[15].mxu0  ;;  %v705_v47 = vpack.c.bf16 %v554_v30, %v554_v30  ;;  %v3580_v11 = vsel %vm1631_vm1, %v741_v2, 0  ;;  %v742_v63 = vpack.c.bf16 %v680_v3, %v680_v3  ;;  %v558_v39 = vadd.f32 %v3532_v21, %v3500_v46 }
 0x166   : > { %v721_v27 = vpack.c.bf16 %v556_v20, %v556_v20  ;;  %v560_v9 = vadd.f32 %v559_v24, %v3497_v40  ;;  %v3583_v15 = vsel %vm1631_vm1, %v739_v6, 0  ;;  %v740_v17 = vpack.c.bf16 %v672_v8, %v672_v8 }
 0x167   : > { %2739 = vmatmul.mubr.bf16.vlgmr.msra.gmra.mrb[24].mxu1 %v701_v23  ;;  %2751 = vmatmul.mubr.bf16.vlgmr.msra.gmra.mrb[32].mxu0 %v703_v18  ;;  %v3589_v20 = vsel %vm1631_vm1, %v742_v63, 0  ;;  %v704_v23 = vpack.c.bf16 %v548_v5, %v548_v5 }
 0x168   : > { %2743 = vmatpush3.bf16.xpose.msra.mxu1 %v718_v26  ;;  %2761 = vmatpush3.bf16.xpose.msra.mxu0 %v721_v27  ;;  %v3592_v25 = vsel %vm1631_vm1, %v740_v17, 0  ;;  %v2722_v26 = vpop.f32.mrb[12].mxu1  ;;  %v722_v27 = vpack.c.bf16 %v560_v9, %v560_v9 }
 0x169   : > { %2744 = vmatprep.mubr.msk.bf16.mxu1 %vm3288_vm0, %v3287_v33  ;;  %2762 = vmatprep.mubr.msk.bf16.mxu0 %vm3288_vm0, %v3287_v33  ;;  %v693_v29 = vadd.f32 %v2722_v26, %v3495_v38  ;;  %v684_v30 = vpop.f32.mrb[13].mxu1 }
 0x16a   : > { %v563_v43 = vpop.f32.mrb[16].mxu0  ;;  %2754 = vmatprep.subr.bf16.mxu1 %v3287_v33  ;;  %2772 = vmatprep.subr.bf16.mxu0 %v3287_v33  ;;  %v685_v32 = vadd.f32 %v684_v30, %v3495_v38  ;;  %v2723_v34 = vpop.f32.mrb[14].mxu1 }
 0x16b   : > { %v565_v48 = vpop.f32.mrb[17].mxu0  ;;  %v564_v62 = vadd.f32 %v563_v43, %v3500_v46  ;;  %v745_v35 = vpack.c.bf16 %v693_v29, %v693_v29  ;;  %v696_v36 = vadd.f32 %v2723_v34, %v3495_v38  ;;  %v687_v37 = vpop.f32.mrb[15].mxu1 }
 0x16c   : > { %v566_v51 = vadd.f32 %v565_v48, %v3497_v40  ;;  %v3557_v52 = vpop.f32.mrb[18].mxu0  ;;  %v743_v41 = vpack.c.bf16 %v685_v32, %v685_v32  ;;  %v688_v42 = vadd.f32 %v687_v37, %v3495_v38 }
 0x16d   : > { %v569_v55 = vpop.f32.mrb[19].mxu0  ;;  %v707_v12 = vpack.c.bf16 %v564_v62, %v564_v62  ;;  %v746_v21 = vpack.c.bf16 %v696_v36, %v696_v36  ;;  %v568_v3 = vadd.f32 %v3557_v52, %v3500_v46 }
 0x16e   : > { %v723_v59 = vpack.c.bf16 %v566_v51, %v566_v51  ;;  %v570_v43 = vadd.f32 %v569_v55, %v3497_v40  ;;  %v3612_v51 = vsel %vm1631_vm1, %v743_v41, 0 }
 0x16f   : > { %2745 = vmatmul.mubr.bf16.vlgmr.msra.gmra.mrb[28].mxu1 %v702_v54  ;;  %2763 = vmatmul.mubr.bf16.vlgmr.msra.gmra.mrb[36].mxu0 %v705_v47  ;;  %v3609_v47 = vsel %vm1631_vm1, %v745_v35, 0  ;;  %v744_v54 = vpack.c.bf16 %v688_v42, %v688_v42  ;;  %v3616_v55 = vsel %vm1631_vm1, %v746_v21, 0  ;;  %v708_v63 = vpack.c.bf16 %v568_v3, %v568_v3 }
 0x170   : > { %2755 = vmatpush3.bf16.xpose.msra.mxu1 %v720_v58  ;;  %2773 = vmatpush3.bf16.xpose.msra.mxu0 %v723_v59  ;;  %v706_v58 = vpack.c.bf16 %v558_v39, %v558_v39  ;;  %v724_v62 = vpack.c.bf16 %v570_v43, %v570_v43 }
 0x171   : > { %2756 = vmatprep.mubr.msk.bf16.mxu1 %vm3288_vm0, %v3287_v33  ;;  %2774 = vmatprep.mubr.msk.bf16.mxu0 %vm3288_vm0, %v3287_v33  ;;  %v3620_v61 = vsel %vm1631_vm1, %v744_v54, 0 }
 0x172   : > { %v573_v10 = vpop.f32.mrb[20].mxu0  ;;  %2766 = vmatprep.subr.bf16.mxu1 %v3287_v33  ;;  %2784 = vmatprep.subr.bf16.mxu0 %v3287_v33 }
 0x173   : > { %v575_v14 = vpop.f32.mrb[21].mxu0  ;;  %v574_v31 = vadd.f32 %v573_v10, %v3500_v46 }
 0x174   : > { %v576_v18 = vadd.f32 %v575_v14, %v3497_v40  ;;  %v3586_v19 = vpop.f32.mrb[22].mxu0 }
 0x175   : > { %v579_v24 = vpop.f32.mrb[23].mxu0  ;;  %v709_v48 = vpack.c.bf16 %v574_v31, %v574_v31 }
 0x176   : > { %v725_v28 = vpack.c.bf16 %v576_v18, %v576_v18  ;;  %v580_v4 = vadd.f32 %v579_v24, %v3497_v40  ;;  %v578_v24 = vadd.f32 %v3586_v19, %v3500_v46  ;;  %v732_v19 = vpack.c.bf16 %v3524_v13, %v3524_v13 }
 0x177   : > { %2757 = vmatmul.mubr.bf16.vlgmr.msra.gmra.mrb[32].mxu1 %v704_v23  ;;  %2775 = vmatmul.mubr.bf16.vlgmr.msra.gmra.mrb[40].mxu0 %v707_v12 }
 0x178   : > { %2767 = vmatpush3.bf16.xpose.msra.mxu1 %v722_v27  ;;  %2785 = vmatpush3.bf16.xpose.msra.mxu0 %v725_v28  ;;  %v726_v14 = vpack.c.bf16 %v580_v4, %v580_v4  ;;  %v710_v27 = vpack.c.bf16 %v578_v24, %v578_v24  ;;  %v1679_v31 = vsel %vm1631_vm1, %v732_v19, 0 }
 0x179   : > { %2768 = vmatprep.mubr.msk.bf16.mxu1 %vm3288_vm0, %v3287_v33  ;;  %2786 = vmatprep.mubr.msk.bf16.mxu0 %vm3288_vm0, %v3287_v33 }
 0x17a   : > { %v583_v45 = vpop.f32.mrb[24].mxu0  ;;  %2778 = vmatprep.subr.bf16.mxu1 %v3287_v33  ;;  %2796 = vmatprep.subr.bf16.mxu0 %v3287_v33 }
 0x17b   : > { %v585_v50 = vpop.f32.mrb[25].mxu0  ;;  %v584_v2 = vadd.f32 %v583_v45, %v3500_v46 }
 0x17c   : > { %v586_v57 = vadd.f32 %v585_v50, %v3497_v40  ;;  %v587_v38 = vpop.f32.mrb[26].mxu0 }
 0x17d   : > { %v588_v59 = vadd.f32 %v587_v38, %v3500_v46  ;;  %v589_v60 = vpop.f32.mrb[27].mxu0  ;;  %v711_v6 = vpack.c.bf16 %v584_v2, %v584_v2 }
 0x17e   : > { %v727_v0 = vpack.c.bf16 %v586_v57, %v586_v57  ;;  %v590_v1 = vadd.f32 %v589_v60, %v3497_v40 }
 0x17f   : > { %2769 = vmatmul.mubr.bf16.vlgmr.msra.gmra.mrb[36].mxu1 %v706_v58  ;;  %2787 = vmatmul.mubr.bf16.vlgmr.msra.gmra.mrb[44].mxu0 %v709_v48 }
 0x180   : > { %2779 = vmatpush3.bf16.xpose.msra.mxu1 %v724_v62  ;;  %2797 = vmatpush3.bf16.xpose.msra.mxu0 %v727_v0  ;;  %v728_v28 = vpack.c.bf16 %v590_v1, %v590_v1 }
 0x181   : > { %2780 = vmatprep.mubr.msk.bf16.mxu1 %vm3288_vm0, %v3287_v33  ;;  %2798 = vmatprep.mubr.msk.bf16.mxu0 %vm3288_vm0, %v3287_v33 }
 0x182   : > { %v593_v5 = vpop.f32.mrb[28].mxu0  ;;  %2790 = vmatprep.subr.bf16.mxu1 %v3287_v33  ;;  %2808 = vmatprep.subr.bf16.mxu0 %v3287_v33 }
 0x183   : > { %v595_v8 = vpop.f32.mrb[29].mxu0  ;;  %v594_v23 = vadd.f32 %v593_v5, %v3500_v46 }
 0x184   : > { %v596_v9 = vadd.f32 %v595_v8, %v3497_v40  ;;  %v597_v10 = vpop.f32.mrb[30].mxu0 }
 0x185   : > { %v598_v52 = vadd.f32 %v597_v10, %v3500_v46  ;;  %v599_v12 = vpop.f32.mrb[31].mxu0  ;;  %v713_v26 = vpack.c.bf16 %v594_v23, %v594_v23  ;;  %v712_v46 = vpack.c.bf16 %v588_v59, %v588_v59 }
 0x186   : > { %v729_v17 = vpack.c.bf16 %v596_v9, %v596_v9  ;;  %v600_v18 = vadd.f32 %v599_v12, %v3497_v40  ;;  %v731_v40 = vpack.c.bf16 %v3516_v7, %v3516_v7 }
 0x187   : > { %2781 = vmatmul.mubr.bf16.vlgmr.msra.gmra.mrb[40].mxu1 %v708_v63  ;;  %2799 = vmatmul.mubr.bf16.vlgmr.msra.gmra.mrb[48].mxu0 %v711_v6  ;;  %v714_v30 = vpack.c.bf16 %v598_v52, %v598_v52 }
 0x188   : > { %2791 = vmatpush3.bf16.xpose.msra.mxu1 %v726_v14  ;;  %2809 = vmatpush3.bf16.xpose.msra.mxu0 %v729_v17  ;;  %v1633_v29 = vsel %vm1631_vm1, %v731_v40, 0  ;;  %v730_v7 = vpack.c.bf16 %v600_v18, %v600_v18 }
 0x189   : > { %2792 = vmatprep.mubr.msk.bf16.mxu1 %vm3288_vm0, %v3287_v33  ;;  %2810 = vmatprep.mubr.msk.bf16.mxu0 %vm3288_vm0, %v3287_v33 }
 0x18a   : > { %2802 = vmatprep.subr.bf16.mxu1 %v3287_v33  ;;  %2820 = vmatprep.subr.bf16.mxu0 %v3287_v33 }
 0x18f   : > { %2793 = vmatmul.mubr.bf16.vlgmr.msra.gmra.mrb[44].mxu1 %v710_v27  ;;  %2811 = vmatmul.mubr.bf16.vlgmr.msra.gmra.mrb[52].mxu0 %v713_v26 }
 0x190   : > { %2803 = vmatpush3.bf16.xpose.msra.mxu1 %v728_v28  ;;  %2804 = vmatprep.mubr.msk.bf16.mxu1 %vm3288_vm0, %v3287_v33 }
 0x191   : > { %2814 = vmatprep.subr.bf16.mxu1 %v3287_v33  ;;  %2821 = vmatpush3.bf16.msra.mxu0 %v1633_v29 }
 0x192   : > { %2822 = vmatprep.mubr.msk.bf16.mxu0 %vm3288_vm0, %v3287_v33  ;;  %2832 = vmatprep.subr.bf16.mxu0 %v3287_v33 }
 0x197   : > { %2805 = vmatmul.mubr.bf16.vlgmr.msra.gmra.mrb[48].mxu1 %v712_v46 }
 0x198   : > { %2815 = vmatpush3.bf16.xpose.msra.mxu1 %v730_v7  ;;  %2816 = vmatprep.mubr.msk.bf16.mxu1 %vm3288_vm0, %v3287_v33 }
 0x199   : > { %2826 = vmatprep.subr.bf16.mxu1 %v3287_v33 }
 0x19f   : > { %2817 = vmatmul.mubr.bf16.vlgmr.msra.gmra.mrb[52].mxu1 %v714_v30 }
 0x1a0   : > { %2827 = vmatpush3.bf16.msra.mxu1 %v1679_v31  ;;  %2828 = vmatprep.mubr.msk.bf16.mxu1 %vm3288_vm0, %v3287_v33 }
 0x1a1   : > { %2838 = vmatprep.subr.bf16.mxu1 %v3287_v33 }
 0x22a   : > { %v781_v32 = vpop.f32.mrb[16].mxu1 }
 0x22b   : > { %v2573_v34 = vmul.f32 -0.088388346, %v781_v32  ;;  %v2728_v35 = vpop.f32.mrb[17].mxu1 }
 0x22c   : > { %v784_v36 = vpop.f32.mrb[18].mxu1 }
 0x22d   : > { %v1419_v37 = vmul.f32 1.442695, %v2573_v34  ;;  %v2729_v39 = vpop.f32.mrb[19].mxu1 }
 0x22f   : > { %3022 = vpow2.f32 %v1419_v37 }
 0x232   : > { %v821_v13 = vpop.f32.mrb[20].mxu1 }
 0x233   : > { %v2574_v41 = vmul.f32 -0.088388346, %v821_v13  ;;  %v2734_v42 = vpop.f32.mrb[21].mxu1 }
 0x234   : > { %v824_v43 = vpop.f32.mrb[22].mxu1 }
 0x235   : > { %v1421_v45 = vmul.f32 1.442695, %v2574_v41  ;;  %v2735_v21 = vpop.f32.mrb[23].mxu1 }
 0x237   : > { %3024 = vpow2.f32 %v1421_v45 }
 0x239   : > { %v3023_v48 = vpop.eup %3022 }
 0x23a   : > { %v1451_v50 = vadd.f32 1.0, %v3023_v48  ;;  %v861_v54 = vpop.f32.mrb[24].mxu1  ;;  %v941_v57 = vpop.f32.mrb[32].mxu0 }
 0x23b   : > { %v2575_v38 = vmul.f32 -0.088388346, %v861_v54  ;;  %v2577_v58 = vmul.f32 -0.088388346, %v941_v57  ;;  %v2740_v59 = vpop.f32.mrb[25].mxu1  ;;  %v2752_v60 = vpop.f32.mrb[33].mxu0 }
 0x23c   : > { %3026 = vrcp.f32 %v1451_v50  ;;  %v864_v62 = vpop.f32.mrb[26].mxu1  ;;  %v944_v0 = vpop.f32.mrb[34].mxu0 }
 0x23d   : > { %v1423_v1 = vmul.f32 1.442695, %v2575_v38  ;;  %v1427_v2 = vmul.f32 1.442695, %v2577_v58  ;;  %v2741_v3 = vpop.f32.mrb[27].mxu1  ;;  %v2753_v4 = vpop.f32.mrb[35].mxu0 }
 0x23f   : > { %3028 = vpow2.f32 %v1423_v1 }
 0x240   : > { %3030 = vpow2.f32 %v1427_v2 }
 0x241   : > { %v3025_v5 = vpop.eup %3024 }
 0x242   : > { %v1452_v6 = vadd.f32 1.0, %v3025_v5  ;;  %v901_v8 = vpop.f32.mrb[28].mxu1  ;;  %v1021_v9 = vpop.f32.mrb[36].mxu0 }
 0x243   : > { %v2576_v10 = vmul.f32 -0.088388346, %v901_v8  ;;  %v2579_v63 = vmul.f32 -0.088388346, %v1021_v9  ;;  %v2746_v52 = vpop.f32.mrb[29].mxu1  ;;  %v2764_v12 = vpop.f32.mrb[37].mxu0 }
 0x244   : > { %3032 = vrcp.f32 %v1452_v6  ;;  %v904_v14 = vpop.f32.mrb[30].mxu1  ;;  %v1024_v17 = vpop.f32.mrb[38].mxu0 }
 0x245   : > { %v1425_v18 = vmul.f32 1.442695, %v2576_v10  ;;  %v1431_v23 = vmul.f32 1.442695, %v2579_v63  ;;  %v2747_v24 = vpop.f32.mrb[31].mxu1  ;;  %v2765_v40 = vpop.f32.mrb[39].mxu0 }
 0x246   : > { %v3027_v26 = vpop.eup %3026 }
 0x247   : > { %v1499_v27 = vmul.f32 1.442695, %v3027_v26  ;;  %3034 = vpow2.f32 %v1425_v18 }
 0x248   : > { %3036 = vpow2.f32 %v1431_v23 }
 0x249   : > { %v3029_v28 = vpop.eup %3028  ;;  %3038 = vpow2.f32 %v1499_v27 }
 0x24a   : > { %v3031_v29 = vpop.eup %3030  ;;  %v1453_v46 = vadd.f32 1.0, %v3029_v28  ;;  %v981_v7 = vpop.f32.mrb[32].mxu1 }
 0x24b   : > { %v1101_v19 = vpop.f32.mrb[40].mxu0  ;;  %v1455_v30 = vadd.f32 1.0, %v3031_v29  ;;  %v2578_v31 = vmul.f32 -0.088388346, %v981_v7  ;;  %v2758_v34 = vpop.f32.mrb[33].mxu1 }
 0x24c   : > { %v2581_v32 = vmul.f32 -0.088388346, %v1101_v19  ;;  %3040 = vrcp.f32 %v1453_v46  ;;  %v984_v35 = vpop.f32.mrb[34].mxu1  ;;  %v2776_v36 = vpop.f32.mrb[41].mxu0 }
 0x24d   : > { %3042 = vrcp.f32 %v1455_v30  ;;  %v1429_v37 = vmul.f32 1.442695, %v2578_v31  ;;  %v2759_v13 = vpop.f32.mrb[35].mxu1  ;;  %v1104_v41 = vpop.f32.mrb[42].mxu0 }
 0x24e   : > { %v1435_v39 = vmul.f32 1.442695, %v2581_v32  ;;  %v3033_v42 = vpop.eup %3032  ;;  %v2777_v43 = vpop.f32.mrb[43].mxu0 }
 0x24f   : > { %v1501_v45 = vmul.f32 1.442695, %v3033_v42  ;;  %3044 = vpow2.f32 %v1429_v37 }
 0x250   : > { %3046 = vpow2.f32 %v1435_v39 }
 0x251   : > { %v3035_v21 = vpop.eup %3034  ;;  %3048 = vpow2.f32 %v1501_v45 }
 0x252   : > { %v3037_v48 = vpop.eup %3036  ;;  %v1454_v50 = vadd.f32 1.0, %v3035_v21  ;;  %v1061_v54 = vpop.f32.mrb[36].mxu1 }
 0x253   : > { %v1181_v57 = vpop.f32.mrb[44].mxu0  ;;  %v3663_v38 = vpop.eup %3038  ;;  %v1457_v58 = vadd.f32 1.0, %v3037_v48  ;;  %v2580_v59 = vmul.f32 -0.088388346, %v1061_v54 }
 0x254   : > { %v2583_v60 = vmul.f32 -0.088388346, %v1181_v57  ;;  %v2770_v62 = vpop.f32.mrb[37].mxu1  ;;  %3050 = vrcp.f32 %v1454_v50  ;;  %v1532_v0 = vsel %vm1531_vm2, %v3663_v38, 0.0  ;;  %v2788_v1 = vpop.f32.mrb[45].mxu0 }
 0x255   : > { %v1064_v2 = vpop.f32.mrb[38].mxu1  ;;  %3052 = vrcp.f32 %v1457_v58  ;;  %v1433_v3 = vmul.f32 1.442695, %v2580_v59  ;;  %1533 = vadd.xlane.f32.xlu0 %v1532_v0  ;;  %v1184_v5 = vpop.f32.mrb[46].mxu0 }
 0x256   : > { %v1439_v4 = vmul.f32 1.442695, %v2583_v60  ;;  %v2771_v6 = vpop.f32.mrb[39].mxu1  ;;  %v3041_v8 = vpop.eup %3040 }
 0x257   : > { %v2789_v9 = vpop.f32.mrb[47].mxu0  ;;  %v3043_v10 = vpop.eup %3042  ;;  %v1503_v63 = vmul.f32 1.442695, %v3041_v8  ;;  %3054 = vpow2.f32 %v1433_v3 }
 0x258   : > { %v1507_v52 = vmul.f32 1.442695, %v3043_v10  ;;  %3056 = vpow2.f32 %v1439_v4 }
 0x259   : > { %v3045_v12 = vpop.eup %3044  ;;  %3058 = vpow2.f32 %v1503_v63 }
 0x25a   : > { %v3047_v14 = vpop.eup %3046  ;;  %3060 = vpow2.f32 %v1507_v52  ;;  %v1456_v17 = vadd.f32 1.0, %v3045_v12  ;;  %v1141_v18 = vpop.f32.mrb[40].mxu1 }
 0x25b   : > { %v1261_v23 = vpop.f32.mrb[48].mxu0  ;;  %v3667_v24 = vpop.eup %3048  ;;  %v1459_v40 = vadd.f32 1.0, %v3047_v14  ;;  %v2582_v26 = vmul.f32 -0.088388346, %v1141_v18 }
 0x25c   : > { %v2585_v27 = vmul.f32 -0.088388346, %v1261_v23  ;;  %v2782_v28 = vpop.f32.mrb[41].mxu1  ;;  %3062 = vrcp.f32 %v1456_v17  ;;  %v1535_v29 = vsel %vm1531_vm2, %v3667_v24, 0.0  ;;  %v2800_v46 = vpop.f32.mrb[49].mxu0 }
 0x25d   : > { %v1144_v7 = vpop.f32.mrb[42].mxu1  ;;  %3064 = vrcp.f32 %v1459_v40  ;;  %v1437_v19 = vmul.f32 1.442695, %v2582_v26  ;;  %1536 = vadd.xlane.f32.xlu0 %v1535_v29  ;;  %v1264_v31 = vpop.f32.mrb[50].mxu0 }
 0x25e   : > { %v1443_v30 = vmul.f32 1.442695, %v2585_v27  ;;  %v2783_v32 = vpop.f32.mrb[43].mxu1  ;;  %v3051_v34 = vpop.eup %3050 }
 0x25f   : > { %v2801_v35 = vpop.f32.mrb[51].mxu0  ;;  %v3053_v36 = vpop.eup %3052  ;;  %v1505_v37 = vmul.f32 1.442695, %v3051_v34  ;;  %3066 = vpow2.f32 %v1437_v19 }
 0x260   : > { %v1511_v39 = vmul.f32 1.442695, %v3053_v36  ;;  %3068 = vpow2.f32 %v1443_v30 }
 0x261   : > { %v3055_v13 = vpop.eup %3054  ;;  %3070 = vpow2.f32 %v1505_v37 }
 0x262   : > { %v3057_v41 = vpop.eup %3056  ;;  %3072 = vpow2.f32 %v1511_v39  ;;  %v1458_v42 = vadd.f32 1.0, %v3055_v13  ;;  %v1221_v43 = vpop.f32.mrb[44].mxu1 }
 0x263   : > { %v1341_v45 = vpop.f32.mrb[52].mxu0  ;;  %v3671_v21 = vpop.eup %3058  ;;  %v1461_v48 = vadd.f32 1.0, %v3057_v41  ;;  %v2584_v50 = vmul.f32 -0.088388346, %v1221_v43 }
 0x264   : > { %v2587_v54 = vmul.f32 -0.088388346, %v1341_v45  ;;  %v2794_v57 = vpop.f32.mrb[45].mxu1  ;;  %v3673_v58 = vpop.eup %3060  ;;  %3074 = vrcp.f32 %v1458_v42  ;;  %v1538_v59 = vsel %vm1531_vm2, %v3671_v21, 0.0 }
 0x265   : > { %v1224_v60 = vpop.f32.mrb[46].mxu1  ;;  %v2812_v62 = vpop.f32.mrb[53].mxu0  ;;  %3076 = vrcp.f32 %v1461_v48  ;;  %v1441_v0 = vmul.f32 1.442695, %v2584_v50  ;;  %v1544_v2 = vsel %vm1531_vm2, %v3673_v58, 0.0  ;;  %1539 = vadd.xlane.f32.xlu1 %v1538_v59 }
 0x266   : > { %v1447_v1 = vmul.f32 1.442695, %v2587_v54  ;;  %v2795_v3 = vpop.f32.mrb[47].mxu1  ;;  %v3063_v4 = vpop.eup %3062  ;;  %1545 = vadd.xlane.f32.xlu0 %v1544_v2 }
 0x267   : > { %v1344_v5 = vpop.f32.mrb[54].mxu0  ;;  %v3065_v6 = vpop.eup %3064  ;;  %v1509_v8 = vmul.f32 1.442695, %v3063_v4  ;;  %3078 = vpow2.f32 %v1441_v0 }
 0x268   : > { %v2813_v9 = vpop.f32.mrb[55].mxu0  ;;  %v1515_v10 = vmul.f32 1.442695, %v3065_v6  ;;  %3080 = vpow2.f32 %v1447_v1 }
 0x269   : > { %v3067_v63 = vpop.eup %3066  ;;  %3082 = vpow2.f32 %v1509_v8 }
 0x26a   : > { %v3069_v52 = vpop.eup %3068  ;;  %3084 = vpow2.f32 %v1515_v10  ;;  %v1460_v12 = vadd.f32 1.0, %v3067_v63  ;;  %v1301_v14 = vpop.f32.mrb[48].mxu1 }
 0x26b   : > { %v3679_v17 = vpop.eup %3070  ;;  %v1463_v18 = vadd.f32 1.0, %v3069_v52  ;;  %v2586_v23 = vmul.f32 -0.088388346, %v1301_v14  ;;  %v2806_v40 = vpop.f32.mrb[49].mxu1 }
 0x26c   : > { %v3681_v26 = vpop.eup %3072  ;;  %3086 = vrcp.f32 %v1460_v12  ;;  %v1541_v27 = vsel %vm1531_vm2, %v3679_v17, 0.0  ;;  %v1304_v28 = vpop.f32.mrb[50].mxu1 }
 0x26d   : > { %3088 = vrcp.f32 %v1463_v18  ;;  %v1445_v29 = vmul.f32 1.442695, %v2586_v23  ;;  %v1550_v46 = vsel %vm1531_vm2, %v3681_v26, 0.0  ;;  %1542 = vadd.xlane.f32.xlu1 %v1541_v27  ;;  %v2807_v7 = vpop.f32.mrb[51].mxu1 }
 0x26e   : > { %v3075_v19 = vpop.eup %3074  ;;  %1551 = vadd.xlane.f32.xlu0 %v1550_v46 }
 0x26f   : > { %v3077_v30 = vpop.eup %3076  ;;  %v1513_v31 = vmul.f32 1.442695, %v3075_v19  ;;  %3090 = vpow2.f32 %v1445_v29 }
 0x270   : > { %v1519_v32 = vmul.f32 1.442695, %v3077_v30 }
 0x271   : > { %v3079_v34 = vpop.eup %3078  ;;  %3092 = vpow2.f32 %v1513_v31 }
 0x272   : > { %v3081_v35 = vpop.eup %3080  ;;  %3094 = vpow2.f32 %v1519_v32  ;;  %v1462_v36 = vadd.f32 1.0, %v3079_v34  ;;  %v1381_v37 = vpop.f32.mrb[52].mxu1 }
 0x273   : > { %v3687_v39 = vpop.eup %3082  ;;  %v1465_v13 = vadd.f32 1.0, %v3081_v35  ;;  %v2588_v41 = vmul.f32 -0.088388346, %v1381_v37  ;;  %v2818_v42 = vpop.f32.mrb[53].mxu1 }
 0x274   : > { %v3689_v43 = vpop.eup %3084  ;;  %3096 = vrcp.f32 %v1462_v36  ;;  %v1547_v45 = vsel %vm1531_vm2, %v3687_v39, 0.0  ;;  %v1384_v48 = vpop.f32.mrb[54].mxu1 }
 0x275   : > { %3098 = vrcp.f32 %v1465_v13  ;;  %v1449_v50 = vmul.f32 1.442695, %v2588_v41  ;;  %v1556_v54 = vsel %vm1531_vm2, %v3689_v43, 0.0  ;;  %1548 = vadd.xlane.f32.xlu1 %v1547_v45  ;;  %v2819_v57 = vpop.f32.mrb[55].mxu1 }
 0x276   : > { %v3087_v59 = vpop.eup %3086  ;;  %1557 = vadd.xlane.f32.xlu0 %v1556_v54 }
 0x277   : > { %v3089_v60 = vpop.eup %3088  ;;  %v1517_v62 = vmul.f32 1.442695, %v3087_v59  ;;  %3100 = vpow2.f32 %v1449_v50 }
 0x278   : > { %v1523_v0 = vmul.f32 1.442695, %v3089_v60 }
 0x279   : > { %v3091_v1 = vpop.eup %3090  ;;  %3102 = vpow2.f32 %v1517_v62 }
 0x27a   : > { %3104 = vpow2.f32 %v1523_v0  ;;  %v1464_v2 = vadd.f32 1.0, %v3091_v1 }
 0x27b   : > { %v3695_v3 = vpop.eup %3092 }
 0x27c   : > { %v3697_v4 = vpop.eup %3094  ;;  %3106 = vrcp.f32 %v1464_v2  ;;  %v1553_v5 = vsel %vm1531_vm2, %v3695_v3, 0.0 }
 0x27d   : > { %v1562_v6 = vsel %vm1531_vm2, %v3697_v4, 0.0  ;;  %1554 = vadd.xlane.f32.xlu1 %v1553_v5 }
 0x27e   : > { %v3097_v8 = vpop.eup %3096  ;;  %1563 = vadd.xlane.f32.xlu0 %v1562_v6 }
 0x27f   : > { %v3099_v9 = vpop.eup %3098  ;;  %v1521_v10 = vmul.f32 1.442695, %v3097_v8 }
 0x280   : > { %v1527_v63 = vmul.f32 1.442695, %v3099_v9 }
 0x281   : > { %v3101_v52 = vpop.eup %3100  ;;  %3108 = vpow2.f32 %v1521_v10 }
 0x282   : > { %3110 = vpow2.f32 %v1527_v63  ;;  %v1466_v12 = vadd.f32 1.0, %v3101_v52 }
 0x283   : > { %v3703_v14 = vpop.eup %3102 }
 0x284   : > { %v3705_v18 = vpop.eup %3104  ;;  %3112 = vrcp.f32 %v1466_v12  ;;  %v1559_v23 = vsel %vm1531_vm2, %v3703_v14, 0.0 }
 0x285   : > { %v1568_v40 = vsel %vm1531_vm2, %v3705_v18, 0.0  ;;  %1560 = vadd.xlane.f32.xlu1 %v1559_v23 }
 0x286   : > { %v3107_v27 = vpop.eup %3106  ;;  %1569 = vadd.xlane.f32.xlu0 %v1568_v40 }
 0x287   : > { %v1525_v28 = vmul.f32 1.442695, %v3107_v27 }
 0x289   : > { %3114 = vpow2.f32 %v1525_v28 }
 0x28b   : > { %v3711_v29 = vpop.eup %3108 }
 0x28c   : > { %v3713_v46 = vpop.eup %3110  ;;  %v1565_v7 = vsel %vm1531_vm2, %v3711_v29, 0.0 }
 0x28d   : > { %v1574_v19 = vsel %vm1531_vm2, %v3713_v46, 0.0  ;;  %1566 = vadd.xlane.f32.xlu1 %v1565_v7 }
 0x28e   : > { %v3113_v30 = vpop.eup %3112  ;;  %1575 = vadd.xlane.f32.xlu0 %v1574_v19 }
 0x28f   : > { %v1529_v31 = vmul.f32 1.442695, %v3113_v30 }
 0x291   : > { %3116 = vpow2.f32 %v1529_v31 }
 0x293   : > { %v3719_v32 = vpop.eup %3114 }
 0x294   : > { %v1571_v34 = vsel %vm1531_vm2, %v3719_v32, 0.0 }
 0x295   : > { %1572 = vadd.xlane.f32.xlu1 %v1571_v34 }
 0x29b   : > { %v3723_v35 = vpop.eup %3116 }
 0x29c   : > { %v1577_v36 = vsel %vm1531_vm2, %v3723_v35, 0.0 }
 0x29d   : > { %1578 = vadd.xlane.f32.xlu1 %v1577_v36 }
 0x2e2   : > { %v1534_v37 = vpop.xlane.xlu0 %1533 }
 0x2e3   : > { %3118 = vrcp.f32 %v1534_v37 }
 0x2ea   : > { %v1537_v13 = vpop.xlane.xlu0 %1536 }
 0x2eb   : > { %3120 = vrcp.f32 %v1537_v13 }
 0x2ed   : > { %v3119_v41 = vpop.eup %3118 }
 0x2ee   : > { %v1596_v42 = vmul.f32 %v3119_v41, %v3663_v38 }
 0x2f0   : > { %2381 = vst.msk [vmem:[%s3731_s6] sm:$0xff] %vm1531_vm2, %v1596_v42  ;;  %v1612_v45 = vpack.c.bf16 %v1596_v42, %v1596_v42 }
 0x2f2   : > { %2823 = vmatmul.mubr.msk.bf16.vlgmr.msra.gmra.mrb[56].mxu0 %vm1531_vm2, %v1612_v45  ;;  %v1540_v48 = vpop.xlane.xlu1 %1539 }
 0x2f3   : > { %2833 = vmatpush3.bf16.msra.mxu0 %v3529_v16  ;;  %v1546_v50 = vpop.xlane.xlu0 %1545  ;;  %3122 = vrcp.f32 %v1540_v48  ;;  %2834 = vmatprep.mubr.msk.bf16.mxu0 %vm3288_vm0, %v3287_v33 }
 0x2f4   : > { %3124 = vrcp.f32 %v1546_v50  ;;  %2844 = vmatprep.subr.bf16.mxu0 %v3287_v33 }
 0x2f5   : > { %v3121_v54 = vpop.eup %3120 }
 0x2f6   : > { %v1597_v38 = vmul.f32 %v3121_v54, %v3667_v24 }
 0x2f8   : > { %2382 = vst.msk [vmem:[%s3731_s6 + $0x8] sm:$0xff] %vm1531_vm2, %v1597_v38  ;;  %v1613_v57 = vpack.c.bf16 %v1597_v38, %v1597_v38 }
 0x2fa   : > { %2829 = vmatmul.mubr.msk.bf16.vlgmr.msra.gmra.mrb[56].mxu1 %vm1531_vm2, %v1613_v57  ;;  %v1543_v59 = vpop.xlane.xlu1 %1542 }
 0x2fb   : > { %2839 = vmatpush3.bf16.msra.mxu1 %v3535_v22  ;;  %v1552_v16 = vpop.xlane.xlu0 %1551  ;;  %3126 = vrcp.f32 %v1543_v59  ;;  %2840 = vmatprep.mubr.msk.bf16.mxu1 %vm3288_vm0, %v3287_v33 }
 0x2fc   : > { %3128 = vrcp.f32 %v1552_v16  ;;  %2850 = vmatprep.subr.bf16.mxu1 %v3287_v33 }
 0x2fd   : > { %v3123_v60 = vpop.eup %3122 }
 0x2fe   : > { %v3125_v62 = vpop.eup %3124  ;;  %v1598_v24 = vmul.f32 %v3123_v60, %v3671_v21 }
 0x2ff   : > { %v1600_v0 = vmul.f32 %v3125_v62, %v3673_v58 }
 0x300   : > { %2383 = vst.msk [vmem:[%s3731_s6 + $0x10] sm:$0xff] %vm1531_vm2, %v1598_v24  ;;  %v1614_v1 = vpack.c.bf16 %v1598_v24, %v1598_v24 }
 0x301   : > { %2385 = vst.msk [vmem:[%s3731_s6 + $0x20] sm:$0xff] %vm1531_vm2, %v1600_v0  ;;  %v1616_v9 = vpack.c.bf16 %v1600_v0, %v1600_v0 }
 0x302   : > { %2835 = vmatmul.mubr.msk.bf16.vlgmr.msra.gmra.mrb[60].mxu0 %vm1531_vm2, %v1614_v1  ;;  %v1549_v22 = vpop.xlane.xlu1 %1548 }
 0x303   : > { %v1558_v2 = vpop.xlane.xlu0 %1557  ;;  %2845 = vmatpush3.bf16.msra.mxu0 %v3554_v49  ;;  %3130 = vrcp.f32 %v1549_v22  ;;  %2846 = vmatprep.mubr.msk.bf16.mxu0 %vm3288_vm0, %v3287_v33 }
 0x304   : > { %3132 = vrcp.f32 %v1558_v2  ;;  %2856 = vmatprep.subr.bf16.mxu0 %v3287_v33 }
 0x305   : > { %v3127_v21 = vpop.eup %3126 }
 0x306   : > { %v3129_v58 = vpop.eup %3128  ;;  %v1599_v5 = vmul.f32 %v3127_v21, %v3679_v17 }
 0x307   : > { %v1602_v6 = vmul.f32 %v3129_v58, %v3681_v26 }
 0x308   : > { %2384 = vst.msk [vmem:[%s3731_s6 + $0x18] sm:$0xff] %vm1531_vm2, %v1599_v5  ;;  %v1615_v8 = vpack.c.bf16 %v1599_v5, %v1599_v5 }
 0x309   : > { %2387 = vst.msk [vmem:[%s3731_s6 + $0x30] sm:$0xff] %vm1531_vm2, %v1602_v6  ;;  %v1618_v52 = vpack.c.bf16 %v1602_v6, %v1602_v6 }
 0x30a   : > { %2841 = vmatmul.mubr.msk.bf16.vlgmr.msra.gmra.mrb[60].mxu1 %vm1531_vm2, %v1615_v8  ;;  %2847 = vmatmul.mubr.msk.bf16.vlgmr.msra.gmra.mrb[64].mxu0 %vm1531_vm2, %v1616_v9  ;;  %v1555_v49 = vpop.xlane.xlu1 %1554 }
 0x30b   : > { %v1564_v10 = vpop.xlane.xlu0 %1563  ;;  %2851 = vmatpush3.bf16.msra.mxu1 %v3563_v56  ;;  %2857 = vmatpush3.bf16.msra.mxu0 %v3551_v44  ;;  %3134 = vrcp.f32 %v1555_v49 }
 0x30c   : > { %3136 = vrcp.f32 %v1564_v10  ;;  %2852 = vmatprep.mubr.msk.bf16.mxu1 %vm3288_vm0, %v3287_v33  ;;  %2858 = vmatprep.mubr.msk.bf16.mxu0 %vm3288_vm0, %v3287_v33 }
 0x30d   : > { %v3131_v17 = vpop.eup %3130  ;;  %2862 = vmatprep.subr.bf16.mxu1 %v3287_v33  ;;  %2868 = vmatprep.subr.bf16.mxu0 %v3287_v33 }
 0x30e   : > { %v3133_v26 = vpop.eup %3132  ;;  %v1601_v63 = vmul.f32 %v3131_v17, %v3687_v39 }
 0x30f   : > { %v1604_v56 = vmul.f32 %v3133_v26, %v3689_v43 }
 0x310   : > { %2386 = vst.msk [vmem:[%s3731_s6 + $0x28] sm:$0xff] %vm1531_vm2, %v1601_v63  ;;  %v1617_v44 = vpack.c.bf16 %v1601_v63, %v1601_v63 }
 0x311   : > { %2389 = vst.msk [vmem:[%s3731_s6 + $0x40] sm:$0xff] %vm1531_vm2, %v1604_v56  ;;  %v1620_v27 = vpack.c.bf16 %v1604_v56, %v1604_v56 }
 0x312   : > { %2853 = vmatmul.mubr.msk.bf16.vlgmr.msra.gmra.mrb[64].mxu1 %vm1531_vm2, %v1617_v44  ;;  %2859 = vmatmul.mubr.msk.bf16.vlgmr.msra.gmra.mrb[68].mxu0 %vm1531_vm2, %v1618_v52  ;;  %v1561_v12 = vpop.xlane.xlu1 %1560 }
 0x313   : > { %v1570_v23 = vpop.xlane.xlu0 %1569  ;;  %2863 = vmatpush3.bf16.msra.mxu1 %v3560_v53  ;;  %2869 = vmatpush3.bf16.msra.mxu0 %v3583_v15  ;;  %3138 = vrcp.f32 %v1561_v12 }
 0x314   : > { %3140 = vrcp.f32 %v1570_v23  ;;  %2864 = vmatprep.mubr.msk.bf16.mxu1 %vm3288_vm0, %v3287_v33  ;;  %2870 = vmatprep.mubr.msk.bf16.mxu0 %vm3288_vm0, %v3287_v33 }
 0x315   : > { %v3135_v39 = vpop.eup %3134  ;;  %2874 = vmatprep.subr.bf16.mxu1 %v3287_v33  ;;  %2880 = vmatprep.subr.bf16.mxu0 %v3287_v33 }
 0x316   : > { %v3137_v43 = vpop.eup %3136  ;;  %v1603_v40 = vmul.f32 %v3135_v39, %v3695_v3 }
 0x317   : > { %v1606_v53 = vmul.f32 %v3137_v43, %v3697_v4 }
 0x318   : > { %2388 = vst.msk [vmem:[%s3731_s6 + $0x38] sm:$0xff] %vm1531_vm2, %v1603_v40  ;;  %v1619_v15 = vpack.c.bf16 %v1603_v40, %v1603_v40 }
 0x319   : > { %2391 = vst.msk [vmem:[%s3731_s6 + $0x50] sm:$0xff] %vm1531_vm2, %v1606_v53  ;;  %v1622_v30 = vpack.c.bf16 %v1606_v53, %v1606_v53 }
 0x31a   : > { %2865 = vmatmul.mubr.msk.bf16.vlgmr.msra.gmra.mrb[68].mxu1 %vm1531_vm2, %v1619_v15  ;;  %2871 = vmatmul.mubr.msk.bf16.vlgmr.msra.gmra.mrb[72].mxu0 %vm1531_vm2, %v1620_v27  ;;  %v1567_v28 = vpop.xlane.xlu1 %1566 }
 0x31b   : > { %v1576_v7 = vpop.xlane.xlu0 %1575  ;;  %2875 = vmatpush3.bf16.msra.mxu1 %v3592_v25  ;;  %2881 = vmatpush3.bf16.msra.mxu0 %v3580_v11  ;;  %3142 = vrcp.f32 %v1567_v28 }
 0x31c   : > { %3144 = vrcp.f32 %v1576_v7  ;;  %2876 = vmatprep.mubr.msk.bf16.mxu1 %vm3288_vm0, %v3287_v33  ;;  %2882 = vmatprep.mubr.msk.bf16.mxu0 %vm3288_vm0, %v3287_v33 }
 0x31d   : > { %v3139_v3 = vpop.eup %3138  ;;  %2886 = vmatprep.subr.bf16.mxu1 %v3287_v33  ;;  %2892 = vmatprep.subr.bf16.mxu0 %v3287_v33 }
 0x31e   : > { %v3141_v4 = vpop.eup %3140  ;;  %v1605_v19 = vmul.f32 %v3139_v3, %v3703_v14 }
 0x31f   : > { %v1608_v25 = vmul.f32 %v3141_v4, %v3705_v18 }
 0x320   : > { %2390 = vst.msk [vmem:[%s3731_s6 + $0x48] sm:$0xff] %vm1531_vm2, %v1605_v19  ;;  %v1621_v11 = vpack.c.bf16 %v1605_v19, %v1605_v19 }
 0x321   : > { %2393 = vst.msk [vmem:[%s3731_s6 + $0x60] sm:$0xff] %vm1531_vm2, %v1608_v25 }
 0x322   : > { %2877 = vmatmul.mubr.msk.bf16.vlgmr.msra.gmra.mrb[72].mxu1 %vm1531_vm2, %v1621_v11  ;;  %2883 = vmatmul.mubr.msk.bf16.vlgmr.msra.gmra.mrb[76].mxu0 %vm1531_vm2, %v1622_v30  ;;  %v1573_v31 = vpop.xlane.xlu1 %1572 }
 0x323   : > { %2887 = vmatpush3.bf16.msra.mxu1 %v3589_v20  ;;  %2893 = vmatpush3.bf16.msra.mxu0 %v3612_v51  ;;  %3146 = vrcp.f32 %v1573_v31  ;;  %v1624_v51 = vpack.c.bf16 %v1608_v25, %v1608_v25 }
 0x324   : > { %2888 = vmatprep.mubr.msk.bf16.mxu1 %vm3288_vm0, %v3287_v33  ;;  %2894 = vmatprep.mubr.msk.bf16.mxu0 %vm3288_vm0, %v3287_v33 }
 0x325   : > { %v3143_v14 = vpop.eup %3142  ;;  %2898 = vmatprep.subr.bf16.mxu1 %v3287_v33  ;;  %2904 = vmatprep.subr.bf16.mxu0 %v3287_v33 }
 0x326   : > { %v3145_v18 = vpop.eup %3144  ;;  %v1607_v34 = vmul.f32 %v3143_v14, %v3711_v29 }
 0x327   : > { %v1610_v36 = vmul.f32 %v3145_v18, %v3713_v46 }
 0x328   : > { %2392 = vst.msk [vmem:[%s3731_s6 + $0x58] sm:$0xff] %vm1531_vm2, %v1607_v34  ;;  %v1623_v20 = vpack.c.bf16 %v1607_v34, %v1607_v34 }
 0x329   : > { %2395 = vst.msk [vmem:[%s3731_s6 + $0x70] sm:$0xff] %vm1531_vm2, %v1610_v36 }
 0x32a   : > { %2889 = vmatmul.mubr.msk.bf16.vlgmr.msra.gmra.mrb[76].mxu1 %vm1531_vm2, %v1623_v20  ;;  %2895 = vmatmul.mubr.msk.bf16.vlgmr.msra.gmra.mrb[80].mxu0 %vm1531_vm2, %v1624_v51  ;;  %v1579_v37 = vpop.xlane.xlu1 %1578 }
 0x32b   : > { %2899 = vmatpush3.bf16.msra.mxu1 %v3620_v61  ;;  %2905 = vmatpush3.bf16.msra.mxu0 %v3609_v47  ;;  %3148 = vrcp.f32 %v1579_v37  ;;  %v1626_v61 = vpack.c.bf16 %v1610_v36, %v1610_v36 }
 0x32c   : > { %2900 = vmatprep.mubr.msk.bf16.mxu1 %vm3288_vm0, %v3287_v33  ;;  %2906 = vmatprep.mubr.msk.bf16.mxu0 %vm3288_vm0, %v3287_v33 }
 0x32d   : > { %v3147_v29 = vpop.eup %3146  ;;  %2910 = vmatprep.subr.bf16.mxu1 %v3287_v33 }
 0x32e   : > { %v1609_v46 = vmul.f32 %v3147_v29, %v3719_v32 }
 0x330   : > { %2394 = vst.msk [vmem:[%s3731_s6 + $0x68] sm:$0xff] %vm1531_vm2, %v1609_v46  ;;  %v1625_v13 = vpack.c.bf16 %v1609_v46, %v1609_v46 }
 0x332   : > { %2901 = vmatmul.mubr.msk.bf16.vlgmr.msra.gmra.mrb[80].mxu1 %vm1531_vm2, %v1625_v13  ;;  %2907 = vmatmul.mubr.msk.bf16.vlgmr.msra.gmra.mrb[84].mxu0 %vm1531_vm2, %v1626_v61 }
 0x333   : > { %2911 = vmatpush3.bf16.msra.mxu1 %v3616_v55  ;;  %2912 = vmatprep.mubr.msk.bf16.mxu1 %vm3288_vm0, %v3287_v33 }
 0x335   : > { %v3149_v47 = vpop.eup %3148 }
 0x336   : > { %v1611_v41 = vmul.f32 %v3149_v47, %v3723_v35 }
 0x338   : > { %2396 = vst.msk [vmem:[%s3731_s6 + $0x78] sm:$0xff] %vm1531_vm2, %v1611_v41  ;;  %v1627_v42 = vpack.c.bf16 %v1611_v41, %v1611_v41 }
 0x33a   : > { %2913 = vmatmul.mubr.msk.bf16.vlgmr.msra.gmra.mrb[84].mxu1 %vm1531_vm2, %v1627_v42 }
 0x3c5   : > { %v1669_v32 = vpop.f32.mrb[56].mxu0 }
 0x3c6   : > { %2365 = vst [vmem:[%s3852_s7] sm:$0xff] %v1669_v32  ;;  %v2824_v55 = vpop.f32.mrb[57].mxu0 }
 0x3c7   : > { %v1672_v33 = vpop.f32.mrb[58].mxu0 }
 0x3c8   : > { %v2825_v45 = vpop.f32.mrb[59].mxu0 }
 0x3cd   : > { %v1715_v48 = vpop.f32.mrb[56].mxu1 }
 0x3ce   : > { %2366 = vst [vmem:[%s3852_s7 + $0x8] sm:$0xff] %v1715_v48  ;;  %v2830_v35 = vpop.f32.mrb[57].mxu1 }
 0x3cf   : > { %v1718_v50 = vpop.f32.mrb[58].mxu1 }
 0x3d0   : > { %v2831_v54 = vpop.f32.mrb[59].mxu1 }
 0x3d5   : > { %v1761_v38 = vpop.f32.mrb[60].mxu0 }
 0x3d6   : > { %2367 = vst [vmem:[%s3852_s7 + $0x10] sm:$0xff] %v1761_v38  ;;  %v2836_v57 = vpop.f32.mrb[61].mxu0 }
 0x3d7   : > { %v1764_v59 = vpop.f32.mrb[62].mxu0 }
 0x3d8   : > { %v2837_v16 = vpop.f32.mrb[63].mxu0 }
 0x3dd   : > { %v1807_v60 = vpop.f32.mrb[60].mxu1  ;;  %v1853_v62 = vpop.f32.mrb[64].mxu0 }
 0x3de   : > { %2368 = vst [vmem:[%s3852_s7 + $0x18] sm:$0xff] %v1807_v60  ;;  %2369 = vst [vmem:[%s3852_s7 + $0x20] sm:$0xff] %v1853_v62  ;;  %v2842_v24 = vpop.f32.mrb[61].mxu1  ;;  %v2848_v0 = vpop.f32.mrb[65].mxu0 }
 0x3df   : > { %v1810_v1 = vpop.f32.mrb[62].mxu1  ;;  %v1856_v22 = vpop.f32.mrb[66].mxu0 }
 0x3e0   : > { %v2843_v2 = vpop.f32.mrb[63].mxu1  ;;  %v2849_v21 = vpop.f32.mrb[67].mxu0 }
 0x3e5   : > { %v1899_v58 = vpop.f32.mrb[64].mxu1  ;;  %v1945_v5 = vpop.f32.mrb[68].mxu0 }
 0x3e6   : > { %2370 = vst [vmem:[%s3852_s7 + $0x28] sm:$0xff] %v1899_v58  ;;  %2371 = vst [vmem:[%s3852_s7 + $0x30] sm:$0xff] %v1945_v5  ;;  %v2854_v6 = vpop.f32.mrb[65].mxu1  ;;  %v2860_v8 = vpop.f32.mrb[69].mxu0 }
 0x3e7   : > { %v1902_v9 = vpop.f32.mrb[66].mxu1  ;;  %v1948_v49 = vpop.f32.mrb[70].mxu0 }
 0x3e8   : > { %v2855_v10 = vpop.f32.mrb[67].mxu1  ;;  %v2861_v17 = vpop.f32.mrb[71].mxu0 }
 0x3ed   : > { %v1991_v26 = vpop.f32.mrb[68].mxu1  ;;  %v2037_v63 = vpop.f32.mrb[72].mxu0 }
 0x3ee   : > { %2372 = vst [vmem:[%s3852_s7 + $0x38] sm:$0xff] %v1991_v26  ;;  %2373 = vst [vmem:[%s3852_s7 + $0x40] sm:$0xff] %v2037_v63  ;;  %v2866_v56 = vpop.f32.mrb[69].mxu1  ;;  %v2872_v44 = vpop.f32.mrb[73].mxu0 }
 0x3ef   : > { %v1994_v52 = vpop.f32.mrb[70].mxu1  ;;  %v2040_v12 = vpop.f32.mrb[74].mxu0 }
 0x3f0   : > { %v2867_v23 = vpop.f32.mrb[71].mxu1  ;;  %v2873_v39 = vpop.f32.mrb[75].mxu0 }
 0x3f5   : > { %v2083_v43 = vpop.f32.mrb[72].mxu1  ;;  %v2129_v40 = vpop.f32.mrb[76].mxu0 }
 0x3f6   : > { %2374 = vst [vmem:[%s3852_s7 + $0x48] sm:$0xff] %v2083_v43  ;;  %2375 = vst [vmem:[%s3852_s7 + $0x50] sm:$0xff] %v2129_v40  ;;  %v2878_v53 = vpop.f32.mrb[73].mxu1  ;;  %v2884_v15 = vpop.f32.mrb[77].mxu0 }
 0x3f7   : > { %v2086_v27 = vpop.f32.mrb[74].mxu1  ;;  %v2132_v28 = vpop.f32.mrb[78].mxu0 }
 0x3f8   : > { %v2879_v7 = vpop.f32.mrb[75].mxu1  ;;  %v2885_v3 = vpop.f32.mrb[79].mxu0 }
 0x3fd   : > { %v2175_v4 = vpop.f32.mrb[76].mxu1  ;;  %v2221_v19 = vpop.f32.mrb[80].mxu0 }
 0x3fe   : > { %2376 = vst [vmem:[%s3852_s7 + $0x58] sm:$0xff] %v2175_v4  ;;  %2377 = vst [vmem:[%s3852_s7 + $0x60] sm:$0xff] %v2221_v19  ;;  %v2890_v25 = vpop.f32.mrb[77].mxu1  ;;  %v2896_v11 = vpop.f32.mrb[81].mxu0 }
 0x3ff   : > { %v2178_v30 = vpop.f32.mrb[78].mxu1  ;;  %v2224_v31 = vpop.f32.mrb[82].mxu0 }
 0x400   : > { %v2891_v14 = vpop.f32.mrb[79].mxu1  ;;  %v2897_v18 = vpop.f32.mrb[83].mxu0 }
 0x405   : > { %v2267_v34 = vpop.f32.mrb[80].mxu1  ;;  %v2313_v36 = vpop.f32.mrb[84].mxu0 }
 0x406   : > { %2378 = vst [vmem:[%s3852_s7 + $0x68] sm:$0xff] %v2267_v34  ;;  %2379 = vst [vmem:[%s3852_s7 + $0x70] sm:$0xff] %v2313_v36  ;;  %v2902_v20 = vpop.f32.mrb[81].mxu1  ;;  %v2908_v51 = vpop.f32.mrb[85].mxu0 }
 0x407   : > { %v2270_v37 = vpop.f32.mrb[82].mxu1  ;;  %v2316_v29 = vpop.f32.mrb[86].mxu0 }
 0x408   : > { %v2903_v46 = vpop.f32.mrb[83].mxu1  ;;  %v2909_v13 = vpop.f32.mrb[87].mxu0 }
 0x40d   : > { %v2359_v61 = vpop.f32.mrb[84].mxu1 }
 0x40e   : > { %2380 = vst [vmem:[%s3852_s7 + $0x78] sm:$0xff] %v2359_v61  ;;  %v2914_v47 = vpop.f32.mrb[85].mxu1 }
 0x40f   : > { %v2362_v41 = vpop.f32.mrb[86].mxu1 }
 0x410   : > { %3221 = shalt.err (!%p3218_p9)
}
 0x411   : > { %s3222_s9 = scalar_lea.hbm %s3874_s13, 2048  ;;  %s3226_s10 = scalar_lea.hbm %s3924_s3, 4096 }
 0x412   : > { %p3223_p2 = scmp.ne.s32.totalorder %s3874_s13, %s3222_s9  ;;  %p3227_p11 = scmp.lt.u32.totalorder %s3874_s13, %s3924_s3 }
 0x413   : > { %p3228_p1 = scmp.lt.u32.totalorder %s3226_s10, %s3222_s9  ;;  %p3230_p6 = scmp.lt.u32.totalorder %s3222_s9, %s3874_s13 }
 0x414   : > { %p3224_p0 = pnand %p3223_p2, %p3408_p12 }
 0x415   : > { %p3229_p4 = por %p3228_p1, %p3227_p11 }
 0x416   : > { %p3225_p5 = pneg %p3224_p0 }
 0x417   : > { %p3231_p8 = por %p3230_p6, %p3229_p4 }
 0x419   : > { %p3232_p10 = pnand %p3231_p8, %p3225_p5 }
 0x41b   : > { %3235 = shalt.err (!%p3232_p10)
}
 0x41c   : > { %s3290_s7 = smov 128   ;;  %s3291_s26 = smov 8   ;;  %v2915_v42 = vpop.f32.mrb[87].mxu1 }
 0x41d   : > { %2922 = dma.vmem_to_hbm [thread:$0]  (%p3408_p12), %s3876_s8, 2048, %s3874_s13, %s2398_s14, %s3290_s7, %s3290_s7, %s3291_s26  }
 0x41e PF: > { %s2435_s25 = sand.u32 1, %s3266_s15   ;;  %p3940_p13 = scmp.ne.s32.totalorder %s3930_s22, 0 }
 0x41f   : > { %p3941_p3 = scmp.ge.s32.totalorder %s3278_s18, 2  ;;  %s2436_s11 = scalar_lea.sflag [#allocation4], %s2435_s25 }
 0x421   : > { %p2933_p7 = pnand %p3941_p3, %p3940_p13 }
 0x423   : > { %3261 = dma.done.wait (!%p2933_p7), %s2436_s11, 2048  }
 0x424   : > { %3263 = vsyncadd (!%p2933_p7), %s2436_s11, 4294965248  ;;  %p19_p9 = scmp.ge.s32.totalorder %s3373_s27, 4   ;;  %s3942_s15 = smov %s3270_s16 }
 0x425   : > { %s3943_s16 = smov %s3274_s17  ;;  %s3944_s17 = smov %s3404_s24 }
 0x426   : > { %s3945_s18 = smov %s3373_s27  ;;  %21 = sbr.rel (!%p19_p9) target bundleno = 6 (0x6), region = 93 }
 0x42d   :  { %2449 = vsyncpa [#allocation3], 1 }
 0x42e   :  { %2451 = vsyncpa [#allocation3 + $0x1], 1 }
 0x42f   :  { %2452 = vsyncpa [#allocation6], 1 }
 0x430   :  { %2453 = vsyncpa [#allocation4], 1 }
 0x431   :  { %2455 = vsyncpa [#allocation4 + $0x1], 1 }

</bundles_post_ra>
